<compile_context>
chip_gen: v6e
topology: v6e:2x2x1
jax: 0.10.0
libtpu: 0.0.40
codegen_flags: <defaults>
</compile_context>

<pallas_src>
import math
from functools import partial

import jax
import jax.numpy as jnp
from jax import lax
from jax.experimental import pallas as pl
from jax.experimental.pallas import tpu as pltpu

_SCOPED_VMEM = 32 * 1024 * 1024


# ----------------------------- tiling helpers ---------------------------------

def _pick_div(n, target, mult):
    """Largest tile t that divides n with t <= target and t % mult == 0.
    Falls back to n (full extent, always a legal block shape)."""
    if n <= target:
        return n
    t = (target // mult) * mult
    while t >= mult:
        if n % t == 0:
            return t
        t -= mult
    return n


def _pick_channel_tile(n_parallel, n_chan, target=512):
    """Channel tile; keep >=2 parallel grid blocks when possible so both
    TensorCores of a v7x megacore get work (e.g. B=1 decode/long-context)."""
    ci = _pick_div(n_chan, target, 128)
    if n_parallel * (n_chan // ci) < 2 and ci > 128:
        ci2 = _pick_div(n_chan, ci // 2, 128)
        if ci2 >= 128:
            ci = ci2
    return ci


# ----------------------------- LayerNorm kernels ------------------------------

def _norm_kernel(x_ref, g_ref, b_ref, y_ref, *, eps):
    x = x_ref[...]
    mean = jnp.mean(x, axis=-1, keepdims=True)
    xc = x - mean
    var = jnp.mean(xc * xc, axis=-1, keepdims=True)
    y_ref[...] = (xc * lax.rsqrt(var + eps) * g_ref[...] + b_ref[...]).astype(y_ref.dtype)


def _addnorm_kernel(x_ref, r_ref, g_ref, b_ref, y_ref, res_ref, *, eps):
    res = x_ref[...] + r_ref[...]
    res_ref[...] = res
    mean = jnp.mean(res, axis=-1, keepdims=True)
    xc = res - mean
    var = jnp.mean(xc * xc, axis=-1, keepdims=True)
    y_ref[...] = (xc * lax.rsqrt(var + eps) * g_ref[...] + b_ref[...]).astype(y_ref.dtype)


def layernorm(x, gamma, beta, eps, residual=None):
    """Fused (residual-add +) LayerNorm.  normed is bf16, residual stays f32."""
    B, L, D = x.shape
    M = B * L
    # Mem-bound: large row tiles (512-1024) sit near the HBM roofline; bound the
    # tile so ~4 double-buffered f32 blocks stay inside the scoped VMEM limit.
    target = min(1024, max(8, ((3 << 20) // (D * 4)) // 8 * 8))
    tm = _pick_div(M, target, 8)
    grid = (M // tm,)
    row_spec = pl.BlockSpec((tm, D), lambda i: (i, 0))
    vec_spec = pl.BlockSpec((1, D), lambda i: (0, 0))
    cp = pltpu.CompilerParams(dimension_semantics=("parallel",),
                              vmem_limit_bytes=_SCOPED_VMEM)

    x2 = x.reshape(M, D)
    g2 = gamma.reshape(1, D)
    b2 = beta.reshape(1, D)

    if residual is None:
        y = pl.pallas_call(
            partial(_norm_kernel, eps=eps),
            out_shape=jax.ShapeDtypeStruct((M, D), jnp.bfloat16),
            grid=grid,
            in_specs=[row_spec, vec_spec, vec_spec],
            out_specs=row_spec,
            compiler_params=cp,
        )(x2, g2, b2)
        return y.reshape(B, L, D), x          # residual == hidden_states (no copy)

    r2 = residual.reshape(M, D)
    y, res = pl.pallas_call(
        partial(_addnorm_kernel, eps=eps),
        out_shape=(jax.ShapeDtypeStruct((M, D), jnp.bfloat16),
                   jax.ShapeDtypeStruct((M, D), jnp.float32)),
        grid=grid,
        in_specs=[row_spec, row_spec, vec_spec, vec_spec],
        out_specs=(row_spec, row_spec),
        compiler_params=cp,
    )(x2, r2, g2, b2)
    return y.reshape(B, L, D), res.reshape(B, L, D)


# ----------------------------- matmul kernels ---------------------------------

def _matmul_kernel(x_ref, w_ref, o_ref, acc_ref):
    @pl.when(pl.program_id(2) == 0)
    def _():
        acc_ref[...] = jnp.zeros_like(acc_ref)

    acc_ref[...] += jnp.dot(x_ref[...], w_ref[...],
                            preferred_element_type=jnp.float32)

    @pl.when(pl.program_id(2) == pl.num_programs(2) - 1)
    def _():
        o_ref[...] = acc_ref[...].astype(o_ref.dtype)


def matmul(x, w, *, out_dtype=jnp.float32, tm=512, tn=512, tk=512):
    """out = x @ w (no bias).  bf16 inputs, f32 MXU accumulation."""
    M, K = x.shape
    N = w.shape[1]
    tm = _pick_div(M, tm, 8)
    tn = _pick_div(N, tn, 128)
    tk = _pick_div(K, tk, 128)
    grid = (M // tm, N // tn, K // tk)
    return pl.pallas_call(
        _matmul_kernel,
        out_shape=jax.ShapeDtypeStruct((M, N), out_dtype),
        grid=grid,
        in_specs=[pl.BlockSpec((tm, tk), lambda i, j, k: (i, k)),
                  pl.BlockSpec((tk, tn), lambda i, j, k: (k, j))],
        out_specs=pl.BlockSpec((tm, tn), lambda i, j, k: (i, j)),
        scratch_shapes=[pltpu.VMEM((tm, tn), jnp.float32)],
        compiler_params=pltpu.CompilerParams(
            dimension_semantics=("parallel", "parallel", "arbitrary"),
            vmem_limit_bytes=_SCOPED_VMEM),
    )(x, w)


def _dual_matmul_kernel(x_ref, wx_ref, wz_ref, ox_ref, oz_ref, accx, accz):
    # in_proj: one pass over x produces both x-half and z-half (no wrapper slice).
    @pl.when(pl.program_id(2) == 0)
    def _():
        accx[...] = jnp.zeros_like(accx)
        accz[...] = jnp.zeros_like(accz)

    xb = x_ref[...]
    accx[...] += jnp.dot(xb, wx_ref[...], preferred_element_type=jnp.float32)
    accz[...] += jnp.dot(xb, wz_ref[...], preferred_element_type=jnp.float32)

    @pl.when(pl.program_id(2) == pl.num_programs(2) - 1)
    def _():
        ox_ref[...] = accx[...].astype(ox_ref.dtype)
        oz_ref[...] = accz[...].astype(oz_ref.dtype)


def in_proj_matmul(x, wx, wz, *, tm=512, tn=512, tk=512):
    M, K = x.shape
    N = wx.shape[1]
    tm = _pick_div(M, tm, 8)
    tn = _pick_div(N, tn, 128)
    tk = _pick_div(K, tk, 128)
    grid = (M // tm, N // tn, K // tk)
    return pl.pallas_call(
        _dual_matmul_kernel,
        out_shape=(jax.ShapeDtypeStruct((M, N), jnp.bfloat16),
                   jax.ShapeDtypeStruct((M, N), jnp.bfloat16)),
        grid=grid,
        in_specs=[pl.BlockSpec((tm, tk), lambda i, j, k: (i, k)),
                  pl.BlockSpec((tk, tn), lambda i, j, k: (k, j)),
                  pl.BlockSpec((tk, tn), lambda i, j, k: (k, j))],
        out_specs=(pl.BlockSpec((tm, tn), lambda i, j, k: (i, j)),
                   pl.BlockSpec((tm, tn), lambda i, j, k: (i, j))),
        scratch_shapes=[pltpu.VMEM((tm, tn), jnp.float32),
                        pltpu.VMEM((tm, tn), jnp.float32)],
        compiler_params=pltpu.CompilerParams(
            dimension_semantics=("parallel", "parallel", "arbitrary"),
            vmem_limit_bytes=_SCOPED_VMEM),
    )(x, wx, wz)


# ----------------------------- causal conv + SiLU -----------------------------

def _causal_conv_silu_kernel(x_ref, w_ref, b_ref, o_ref, halo_ref, *, K):
    # Time is the innermost ("arbitrary") grid axis: the last (K-1) rows of the
    # previous chunk are carried in VMEM scratch (causal halo), so each grid
    # step only touches a (Tl, Ci) tile regardless of L.
    @pl.when(pl.program_id(2) == 0)
    def _():
        halo_ref[...] = jnp.zeros_like(halo_ref)      # causal zero padding

    x = x_ref[...].astype(jnp.float32)                # (Tl, Ci)
    w = w_ref[...]                                    # (K, Ci)
    prev = halo_ref[...]                              # (K-1, Ci)
    Tl = x.shape[0]

    xext = jnp.concatenate([prev, x], axis=0)         # (Tl + K - 1, Ci), once/chunk
    acc = b_ref[...] + x * w[K - 1:K, :]
    for k in range(K - 1):                            # K is tiny & static (d_conv = 4)
        acc = acc + xext[k:k + Tl, :] * w[k:k + 1, :]

    halo_ref[...] = x[Tl - (K - 1):, :]               # halo for the next time chunk
    o_ref[...] = (acc * jax.nn.sigmoid(acc)).astype(o_ref.dtype)   # SiLU


def causal_conv_silu(x, w_kc, bias):
    B, L, C = x.shape
    K = w_kc.shape[0]
    Ci = _pick_channel_tile(B, C, 512)
    Tl = _pick_div(L, 512, 8)
    grid = (B, C // Ci, L // Tl)
    chan_spec = pl.BlockSpec((None, Tl, Ci), lambda b, c, t: (b, t, c))
    return pl.pallas_call(
        partial(_causal_conv_silu_kernel, K=K),
        out_shape=jax.ShapeDtypeStruct((B, L, C), jnp.bfloat16),
        grid=grid,
        in_specs=[chan_spec,
                  pl.BlockSpec((K, Ci), lambda b, c, t: (0, c)),
                  pl.BlockSpec((1, Ci), lambda b, c, t: (0, c))],
        out_specs=chan_spec,
        scratch_shapes=[pltpu.VMEM((K - 1, Ci), jnp.float32)],     # causal halo
        compiler_params=pltpu.CompilerParams(
            dimension_semantics=("parallel", "parallel", "arbitrary"),
            vmem_limit_bytes=_SCOPED_VMEM),
    )(x, w_kc, bias.reshape(1, C))


# ----------------------------- selective scan ---------------------------------

def _selective_scan_kernel(u_ref, delta_ref, bc_ref, z_ref, at_ref, wdt_ref,
                           d_ref, dtb_ref, o_ref,
                           h_ref, da_ref, dbu_ref, hs_ref, *, d_state, dt_rank):
    # Grid: (batch, d_inner tile, time chunk); time chunk is innermost and
    # "arbitrary" so the SSM state h persists in VMEM scratch across chunks of
    # the same (b, c).  Do NOT reorder the grid or its dimension_semantics.
    @pl.when(pl.program_id(2) == 0)
    def _():
        h_ref[...] = jnp.zeros_like(h_ref)

    u = u_ref[...].astype(jnp.float32)          # (Tc, Ci)
    z = z_ref[...].astype(jnp.float32)          # (Tc, Ci)
    A_T = at_ref[...]                           # (S, Ci)
    delta = delta_ref[...]                      # (Tc, dt_rank) f32
    wdt = wdt_ref[...]                          # (dt_rank, Ci) f32

    # dt_proj fused in as a low-rank product (no dense d_inner x d_inner weight,
    # no (M, d_inner) dt_raw HBM intermediate): dt = softplus(delta @ W_dt + b).
    if dt_rank >= 8:
        dt = jnp.dot(delta, wdt, preferred_element_type=jnp.float32)
    else:                                       # tiny rank: unrolled outer products
        dt = delta[:, 0:1] * wdt[0:1, :]
        for r in range(1, dt_rank):
            dt = dt + delta[:, r:r + 1] * wdt[r:r + 1, :]
    dt = dt + dtb_ref[...]
    dt = jnp.where(dt > 20.0, dt, jnp.log1p(jnp.exp(dt)))       # softplus

    bc = bc_ref[...].astype(jnp.float32)        # (Tc, 2S)
    Bc = bc[:, :d_state]                        # (Tc, S)
    Cc = bc[:, d_state:]                        # (Tc, S)

    # Batched precompute off the serial critical path: the exp fills the EUP
    # pipeline and the cross-lane broadcasts happen once per chunk.
    da_ref[...] = jnp.exp(dt[:, None, :] * A_T[None, :, :])     # (Tc, S, Ci)
    dbu_ref[...] = Bc[:, :, None] * (dt * u)[:, None, :]        # (Tc, S, Ci)

    Tc = u.shape[0]
    U = 4 if Tc % 4 == 0 else (2 if Tc % 2 == 0 else 1)

    def step(i, h):
        # Manual unroll: gives the LLO scheduler cross-iteration visibility to
        # overlap the da/dbu loads, the FMA and the hs store across steps.
        for j in range(U):
            t = i * U + j
            h = da_ref[t] * h + dbu_ref[t]      # pure VPU FMA on (S, Ci), f32
            hs_ref[t] = h.astype(hs_ref.dtype)  # bf16 snapshot: halves vst pressure
        return h

    h_ref[...] = lax.fori_loop(0, Tc // U, step, h_ref[...])

    # Batched readout: y[t] = sum_s C[t,s] * h_t[s,:]  + D * u
    y = jnp.sum(Cc[:, :, None] * hs_ref[...], axis=1)           # (Tc, Ci) f32
    y = y + d_ref[...] * u
    o_ref[...] = (y * (z * jax.nn.sigmoid(z))).astype(o_ref.dtype)


def selective_scan(u, delta, bc, z, A_T, wdt, Dp, dt_bias):
    B, L, d_inner = u.shape
    d_state = A_T.shape[0]
    dt_rank = delta.shape[-1]
    Ci = _pick_channel_tile(B, d_inner, 512)    # channel tile
    Tc = _pick_div(L, 64, 8)                    # time chunk
    grid = (B, d_inner // Ci, L // Tc)

    chan_spec = pl.BlockSpec((None, Tc, Ci), lambda b, c, t: (b, t, c))
    return pl.pallas_call(
        partial(_selective_scan_kernel, d_state=d_state, dt_rank=dt_rank),
        out_shape=jax.ShapeDtypeStruct((B, L, d_inner), jnp.bfloat16),
        grid=grid,
        in_specs=[chan_spec,                                                    # u
                  pl.BlockSpec((None, Tc, dt_rank), lambda b, c, t: (b, t, 0)),  # delta
                  pl.BlockSpec((None, Tc, 2 * d_state), lambda b, c, t: (b, t, 0)),  # B,C
                  chan_spec,                                                    # z
                  pl.BlockSpec((d_state, Ci), lambda b, c, t: (0, c)),           # A^T
                  pl.BlockSpec((dt_rank, Ci), lambda b, c, t: (0, c)),           # W_dt
                  pl.BlockSpec((1, Ci), lambda b, c, t: (0, c)),                 # D
                  pl.BlockSpec((1, Ci), lambda b, c, t: (0, c))],                # dt bias
        out_specs=chan_spec,
        scratch_shapes=[
            pltpu.VMEM((d_state, Ci), jnp.float32),        # carried SSM state h
            pltpu.VMEM((Tc, d_state, Ci), jnp.float32),    # dA chunk
            pltpu.VMEM((Tc, d_state, Ci), jnp.float32),    # dB*u chunk
            pltpu.VMEM((Tc, d_state, Ci), jnp.bfloat16),   # per-step h (readout only)
        ],
        compiler_params=pltpu.CompilerParams(
            dimension_semantics=("parallel", "parallel", "arbitrary"),
            vmem_limit_bytes=_SCOPED_VMEM),
    )(u, delta, bc, z, A_T, wdt,
      Dp.reshape(1, d_inner), dt_bias.reshape(1, d_inner))


# ----------------------------- MambaBlock forward ----------------------------

def mamba_block_forward(params, hidden_states, residual=None):
    """Returns (hidden_states, residual) like the PyTorch MambaBlock."""
    B, L, dim = hidden_states.shape
    d_inner = params["in_proj_wx"].shape[1]
    d_state = params["A_log"].shape[1]
    dt_rank = params["dt_proj_w"].shape[0]
    M = B * L

    normed, residual_out = layernorm(hidden_states, params["norm_w"],
                                     params["norm_b"], params["norm_eps"], residual)

    # in_proj: x-half and z-half emitted as separate lane-dense bf16 outputs.
    x_part, z_part = in_proj_matmul(normed.reshape(M, dim),
                                    params["in_proj_wx"], params["in_proj_wz"])
    x_part = x_part.reshape(B, L, d_inner)
    z_part = z_part.reshape(B, L, d_inner)

    x_conv = causal_conv_silu(x_part, params["conv_w"], params["conv_b"])

    # x_proj stays low-rank: one small matmul emits (M, dt_rank + 2*d_state);
    # the tiny delta/BC split is a wrapper-level slice (negligible traffic).
    dbc = matmul(x_conv.reshape(M, d_inner), params["xproj_w"],
                 out_dtype=jnp.float32)
    delta = dbc[:, :dt_rank].reshape(B, L, dt_rank)
    bcm = dbc[:, dt_rank:].reshape(B, L, 2 * d_state)

    A_T = -jnp.exp(params["A_log"]).T           # (d_state, d_inner), tiny
    y = selective_scan(x_conv, delta, bcm, z_part, A_T, params["dt_proj_w"],
                       params["D"], params["dt_proj_b"])

    out = matmul(y.reshape(M, d_inner), params["out_proj_w"],
                 out_dtype=jnp.float32).reshape(B, L, dim)
    return out, residual_out


# TODO(synk): inference_params / incremental-state (single-step decode) path of
# MambaMixer is not implemented; this covers the full-sequence forward only.


# ----------------------------- parameter init --------------------------------

def init_params(key, dim, d_state=16, d_conv=4, expand=2):
    d_inner = expand * dim
    dt_rank = math.ceil(dim / 16)
    ks = jax.random.split(key, 8)

    in_proj_w = jax.random.normal(ks[0], (dim, 2 * d_inner), jnp.float32) * 0.1
    conv_w_torch = jax.random.normal(ks[1], (d_inner, 1, d_conv), jnp.float32) * 0.2
    conv_b = jax.random.normal(ks[2], (d_inner,), jnp.float32) * 0.1
    x_proj_w = jax.random.normal(ks[3], (d_inner, dt_rank + 2 * d_state), jnp.float32) * 0.1
    dt_proj_w = jax.random.normal(ks[4], (dt_rank, d_inner), jnp.float32) * 0.1
    dt_proj_b = jax.random.normal(ks[5], (d_inner,), jnp.float32) * 0.1
    out_proj_w = jax.random.normal(ks[6], (d_inner, dim), jnp.float32) * 0.1

    params = {
        "norm_eps": 1e-5,
        "norm_w": jnp.ones((dim,), jnp.float32),
        "norm_b": jnp.zeros((dim,), jnp.float32),
        # matmul weights stored bf16 (MXU fast path, halved HBM/VMEM traffic)
        "in_proj_wx": in_proj_w[:, :d_inner].astype(jnp.bfloat16),
        "in_proj_wz": in_proj_w[:, d_inner:].astype(jnp.bfloat16),
        "xproj_w": x_proj_w.astype(jnp.bfloat16),        # columns = [delta | B | C]
        "out_proj_w": out_proj_w.astype(jnp.bfloat16),
        # low-rank dt_proj applied inside the scan kernel; kept f32
        "dt_proj_w": dt_proj_w,                          # (dt_rank, d_inner)
        "dt_proj_b": dt_proj_b,
        # elementwise/scan params stay f32
        "conv_w": jnp.transpose(conv_w_torch[:, 0, :], (1, 0)),   # (K, d_inner)
        "conv_b": conv_b,
        "A_log": jnp.log(jnp.tile(jnp.arange(1, d_state + 1, dtype=jnp.float32)[None, :],
                                  (d_inner, 1))),                 # (d_inner, d_state)
        "D": jnp.ones((d_inner,), jnp.float32),
    }
    return params, ks[7]


# ----------------------------- main -------------------------------------------

if __name__ == "__main__":
    B, L, dim = 2, 8, 32
    key = jax.random.PRNGKey(0)
    params, xkey = init_params(key, dim)
    x = jax.random.normal(xkey, (B, L, dim), jnp.float32)

    fwd_first = jax.jit(lambda h: mamba_block_forward(params, h, residual=None))
    fwd_next = jax.jit(lambda h, r: mamba_block_forward(params, h, residual=r))

    h1, r1 = fwd_first(x)                 # residual=None path
    jax.block_until_ready((h1, r1))
    h2, r2 = fwd_next(h1, r1)             # residual-add path
    jax.block_until_ready((h2, r2))

    assert h1.shape == (B, L, dim) and r1.shape == (B, L, dim)
    assert h2.shape == (B, L, dim) and r2.shape == (B, L, dim)
    assert bool(jnp.all(jnp.isfinite(h1))) and bool(jnp.all(jnp.isfinite(h2)))
    print("KERNEL_OK")
</pallas_src>

<mosaic_0001>
module attributes {stable_mosaic.version = 11 : i64} {
  func.func @_norm_kernel(%arg0: i32, %arg1: memref<16x32xf32, #tpu.memory_space<vmem>>, %arg2: memref<1x32xf32, #tpu.memory_space<vmem>>, %arg3: memref<1x32xf32, #tpu.memory_space<vmem>>, %arg4: memref<16x32xbf16, #tpu.memory_space<vmem>>) attributes {dimension_semantics = [#tpu.dimension_semantics<parallel>], iteration_bounds = array<i64: 1>, scalar_prefetch = 0 : i64, scratch_operands = 0 : i64, tpu.core_type = #tpu.core_type<tc>, window_params = [{transform_indices = @transform_0, window_bounds = array<i64: 16, 32>}, {pipeline_mode = #tpu.pipeline_mode<synchronous>, transform_indices = @transform_1, window_bounds = array<i64: 1, 32>}, {pipeline_mode = #tpu.pipeline_mode<synchronous>, transform_indices = @transform_2, window_bounds = array<i64: 1, 32>}, {transform_indices = @transform_3, window_bounds = array<i64: 16, 32>}]} {
    %c0 = arith.constant 0 : index
    %c0_0 = arith.constant 0 : index
    %0 = vector.load %arg1[%c0, %c0_0] : memref<16x32xf32, #tpu.memory_space<vmem>>, vector<16x32xf32>
    %cst = arith.constant dense<0.000000e+00> : vector<16xf32>
    %1 = vector.multi_reduction <add>, %0, %cst [1] : vector<16x32xf32> to vector<16xf32>
    %2 = vector.shape_cast %1 : vector<16xf32> to vector<16x1xf32>
    %cst_1 = arith.constant 3.200000e+01 : f32
    %3 = vector.broadcast %cst_1 : f32 to vector<16x1xf32>
    %4 = arith.divf %2, %3 : vector<16x1xf32>
    %5 = vector.broadcast %4 : vector<16x1xf32> to vector<16x32xf32>
    %6 = arith.subf %0, %5 : vector<16x32xf32>
    %7 = arith.mulf %6, %6 : vector<16x32xf32>
    %cst_2 = arith.constant dense<0.000000e+00> : vector<16xf32>
    %8 = vector.multi_reduction <add>, %7, %cst_2 [1] : vector<16x32xf32> to vector<16xf32>
    %9 = vector.shape_cast %8 : vector<16xf32> to vector<16x1xf32>
    %cst_3 = arith.constant 3.200000e+01 : f32
    %10 = vector.broadcast %cst_3 : f32 to vector<16x1xf32>
    %11 = arith.divf %9, %10 : vector<16x1xf32>
    %cst_4 = arith.constant 9.99999974E-6 : f32
    %12 = vector.broadcast %cst_4 : f32 to vector<16x1xf32>
    %13 = arith.addf %11, %12 : vector<16x1xf32>
    %14 = math.rsqrt %13 : vector<16x1xf32>
    %15 = vector.broadcast %14 : vector<16x1xf32> to vector<16x32xf32>
    %16 = arith.mulf %6, %15 : vector<16x32xf32>
    %c0_5 = arith.constant 0 : index
    %c0_6 = arith.constant 0 : index
    %17 = vector.load %arg2[%c0_5, %c0_6] : memref<1x32xf32, #tpu.memory_space<vmem>>, vector<1x32xf32>
    %18 = vector.broadcast %17 : vector<1x32xf32> to vector<16x32xf32>
    %19 = arith.mulf %16, %18 : vector<16x32xf32>
    %c0_7 = arith.constant 0 : index
    %c0_8 = arith.constant 0 : index
    %20 = vector.load %arg3[%c0_7, %c0_8] : memref<1x32xf32, #tpu.memory_space<vmem>>, vector<1x32xf32>
    %21 = vector.broadcast %20 : vector<1x32xf32> to vector<16x32xf32>
    %22 = arith.addf %19, %21 : vector<16x32xf32>
    %23 = arith.truncf %22 : vector<16x32xf32> to vector<16x32xbf16>
    %c0_9 = arith.constant 0 : index
    %c0_10 = arith.constant 0 : index
    %24 = vector.load %arg4[%c0_9, %c0_10] : memref<16x32xbf16, #tpu.memory_space<vmem>>, vector<16x32xbf16>
    tpu.vector_store %arg4[%c0_9, %c0_10], %23 {strides = array<i32>} : memref<16x32xbf16, #tpu.memory_space<vmem>>, vector<16x32xbf16>,
    return
  }
  func.func @transform_0(%arg0: i32) -> (i32, i32) {
    %c0_i32 = arith.constant 0 : i32
    %c0_i32_0 = arith.constant 0 : i32
    return %arg0, %c0_i32 : i32, i32
  }
  func.func @transform_1(%arg0: i32) -> (i32, i32) {
    %c0_i32 = arith.constant 0 : i32
    %c0_i32_0 = arith.constant 0 : i32
    %c0_i32_1 = arith.constant 0 : i32
    return %c0_i32, %c0_i32_0 : i32, i32
  }
  func.func @transform_2(%arg0: i32) -> (i32, i32) {
    %c0_i32 = arith.constant 0 : i32
    %c0_i32_0 = arith.constant 0 : i32
    %c0_i32_1 = arith.constant 0 : i32
    return %c0_i32, %c0_i32_0 : i32, i32
  }
  func.func @transform_3(%arg0: i32) -> (i32, i32) {
    %c0_i32 = arith.constant 0 : i32
    %c0_i32_0 = arith.constant 0 : i32
    return %arg0, %c0_i32 : i32, i32
  }
}

module attributes {stable_mosaic.version = 11 : i64} {
  func.func @_dual_matmul_kernel(%arg0: i32, %arg1: i32, %arg2: i32, %arg3: memref<16x32xbf16, #tpu.memory_space<vmem>>, %arg4: memref<32x64xbf16, #tpu.memory_space<vmem>>, %arg5: memref<32x64xbf16, #tpu.memory_space<vmem>>, %arg6: memref<16x64xbf16, #tpu.memory_space<vmem>>, %arg7: memref<16x64xbf16, #tpu.memory_space<vmem>>, %arg8: memref<16x64xf32, #tpu.memory_space<vmem>>, %arg9: memref<16x64xf32, #tpu.memory_space<vmem>>) attributes {dimension_semantics = [#tpu.dimension_semantics<parallel>, #tpu.dimension_semantics<parallel>, #tpu.dimension_semantics<arbitrary>], iteration_bounds = array<i64: 1, 1, 1>, scalar_prefetch = 0 : i64, scratch_operands = 2 : i64, tpu.core_type = #tpu.core_type<tc>, window_params = [{transform_indices = @transform_0, window_bounds = array<i64: 16, 32>}, {transform_indices = @transform_1, window_bounds = array<i64: 32, 64>}, {transform_indices = @transform_2, window_bounds = array<i64: 32, 64>}, {transform_indices = @transform_3, window_bounds = array<i64: 16, 64>}, {transform_indices = @transform_4, window_bounds = array<i64: 16, 64>}]} {
    %c0_i32 = arith.constant 0 : i32
    %0 = arith.cmpi eq, %arg2, %c0_i32 : i32
    %1 = arith.extui %0 : i1 to i32
    %c0_i32_0 = arith.constant 0 : i32
    %2 = arith.cmpi ne, %1, %c0_i32_0 : i32
    scf.if %2 {
      %cst_17 = arith.constant 0.000000e+00 : f32
      %17 = vector.broadcast %cst_17 : f32 to vector<16x64xf32>
      %c0_18 = arith.constant 0 : index
      %c0_19 = arith.constant 0 : index
      %18 = vector.load %arg8[%c0_18, %c0_19] : memref<16x64xf32, #tpu.memory_space<vmem>>, vector<16x64xf32>
      tpu.vector_store %arg8[%c0_18, %c0_19], %17 {strides = array<i32>} : memref<16x64xf32, #tpu.memory_space<vmem>>, vector<16x64xf32>,
      %cst_20 = arith.constant 0.000000e+00 : f32
      %19 = vector.broadcast %cst_20 : f32 to vector<16x64xf32>
      %c0_21 = arith.constant 0 : index
      %c0_22 = arith.constant 0 : index
      %20 = vector.load %arg9[%c0_21, %c0_22] : memref<16x64xf32, #tpu.memory_space<vmem>>, vector<16x64xf32>
      tpu.vector_store %arg9[%c0_21, %c0_22], %19 {strides = array<i32>} : memref<16x64xf32, #tpu.memory_space<vmem>>, vector<16x64xf32>,
    } else {
    }
    %c0 = arith.constant 0 : index
    %c0_1 = arith.constant 0 : index
    %3 = vector.load %arg3[%c0, %c0_1] : memref<16x32xbf16, #tpu.memory_space<vmem>>, vector<16x32xbf16>
    %c0_2 = arith.constant 0 : index
    %c0_3 = arith.constant 0 : index
    %4 = vector.load %arg8[%c0_2, %c0_3] : memref<16x64xf32, #tpu.memory_space<vmem>>, vector<16x64xf32>
    %c0_4 = arith.constant 0 : index
    %c0_5 = arith.constant 0 : index
    %5 = vector.load %arg4[%c0_4, %c0_5] : memref<32x64xbf16, #tpu.memory_space<vmem>>, vector<32x64xbf16>
    %cst = arith.constant dense<0.000000e+00> : vector<16x64xf32>
    %6 = tpu.matmul %3, %5, %cst {dimension_numbers = #tpu.dot_dimension_numbers<[1], [0], [0], [1], [0, 0, 1, 1], [], []>} : vector<16x32xbf16>, vector<32x64xbf16>, vector<16x64xf32> -> vector<16x64xf32>
    %7 = arith.addf %4, %6 : vector<16x64xf32>
    %c0_6 = arith.constant 0 : index
    %c0_7 = arith.constant 0 : index
    %8 = vector.load %arg8[%c0_6, %c0_7] : memref<16x64xf32, #tpu.memory_space<vmem>>, vector<16x64xf32>
    tpu.vector_store %arg8[%c0_6, %c0_7], %7 {strides = array<i32>} : memref<16x64xf32, #tpu.memory_space<vmem>>, vector<16x64xf32>,
    %c0_8 = arith.constant 0 : index
    %c0_9 = arith.constant 0 : index
    %9 = vector.load %arg9[%c0_8, %c0_9] : memref<16x64xf32, #tpu.memory_space<vmem>>, vector<16x64xf32>
    %c0_10 = arith.constant 0 : index
    %c0_11 = arith.constant 0 : index
    %10 = vector.load %arg5[%c0_10, %c0_11] : memref<32x64xbf16, #tpu.memory_space<vmem>>, vector<32x64xbf16>
    %cst_12 = arith.constant dense<0.000000e+00> : vector<16x64xf32>
    %11 = tpu.matmul %3, %10, %cst_12 {dimension_numbers = #tpu.dot_dimension_numbers<[1], [0], [0], [1], [0, 0, 1, 1], [], []>} : vector<16x32xbf16>, vector<32x64xbf16>, vector<16x64xf32> -> vector<16x64xf32>
    %12 = arith.addf %9, %11 : vector<16x64xf32>
    %c0_13 = arith.constant 0 : index
    %c0_14 = arith.constant 0 : index
    %13 = vector.load %arg9[%c0_13, %c0_14] : memref<16x64xf32, #tpu.memory_space<vmem>>, vector<16x64xf32>
    tpu.vector_store %arg9[%c0_13, %c0_14], %12 {strides = array<i32>} : memref<16x64xf32, #tpu.memory_space<vmem>>, vector<16x64xf32>,
    %c0_i32_15 = arith.constant 0 : i32
    %14 = arith.cmpi eq, %arg2, %c0_i32_15 : i32
    %15 = arith.extui %14 : i1 to i32
    %c0_i32_16 = arith.constant 0 : i32
    %16 = arith.cmpi ne, %15, %c0_i32_16 : i32
    scf.if %16 {
      %c0_17 = arith.constant 0 : index
      %c0_18 = arith.constant 0 : index
      %17 = vector.load %arg8[%c0_17, %c0_18] : memref<16x64xf32, #tpu.memory_space<vmem>>, vector<16x64xf32>
      %18 = arith.truncf %17 : vector<16x64xf32> to vector<16x64xbf16>
      %c0_19 = arith.constant 0 : index
      %c0_20 = arith.constant 0 : index
      %19 = vector.load %arg6[%c0_19, %c0_20] : memref<16x64xbf16, #tpu.memory_space<vmem>>, vector<16x64xbf16>
      tpu.vector_store %arg6[%c0_19, %c0_20], %18 {strides = array<i32>} : memref<16x64xbf16, #tpu.memory_space<vmem>>, vector<16x64xbf16>,
      %c0_21 = arith.constant 0 : index
      %c0_22 = arith.constant 0 : index
      %20 = vector.load %arg9[%c0_21, %c0_22] : memref<16x64xf32, #tpu.memory_space<vmem>>, vector<16x64xf32>
      %21 = arith.truncf %20 : vector<16x64xf32> to vector<16x64xbf16>
      %c0_23 = arith.constant 0 : index
      %c0_24 = arith.constant 0 : index
      %22 = vector.load %arg7[%c0_23, %c0_24] : memref<16x64xbf16, #tpu.memory_space<vmem>>, vector<16x64xbf16>
      tpu.vector_store %arg7[%c0_23, %c0_24], %21 {strides = array<i32>} : memref<16x64xbf16, #tpu.memory_space<vmem>>, vector<16x64xbf16>,
    } else {
    }
    return
  }
  func.func @transform_0(%arg0: i32, %arg1: i32, %arg2: i32) -> (i32, i32) {
    %c0_i32 = arith.constant 0 : i32
    return %arg0, %arg2 : i32, i32
  }
  func.func @transform_1(%arg0: i32, %arg1: i32, %arg2: i32) -> (i32, i32) {
    %c0_i32 = arith.constant 0 : i32
    return %arg2, %arg1 : i32, i32
  }
  func.func @transform_2(%arg0: i32, %arg1: i32, %arg2: i32) -> (i32, i32) {
    %c0_i32 = arith.constant 0 : i32
    return %arg2, %arg1 : i32, i32
  }
  func.func @transform_3(%arg0: i32, %arg1: i32, %arg2: i32) -> (i32, i32) {
    %c0_i32 = arith.constant 0 : i32
    return %arg0, %arg1 : i32, i32
  }
  func.func @transform_4(%arg0: i32, %arg1: i32, %arg2: i32) -> (i32, i32) {
    %c0_i32 = arith.constant 0 : i32
    return %arg0, %arg1 : i32, i32
  }
}

module attributes {stable_mosaic.version = 11 : i64} {
  func.func @_causal_conv_silu_kernel(%arg0: i32, %arg1: i32, %arg2: i32, %arg3: memref<1x8x64xbf16, #tpu.memory_space<vmem>>, %arg4: memref<4x64xf32, #tpu.memory_space<vmem>>, %arg5: memref<1x64xf32, #tpu.memory_space<vmem>>, %arg6: memref<1x8x64xbf16, #tpu.memory_space<vmem>>, %arg7: memref<3x64xf32, #tpu.memory_space<vmem>>) attributes {dimension_semantics = [#tpu.dimension_semantics<parallel>, #tpu.dimension_semantics<parallel>, #tpu.dimension_semantics<arbitrary>], iteration_bounds = array<i64: 2, 1, 1>, scalar_prefetch = 0 : i64, scratch_operands = 1 : i64, tpu.core_type = #tpu.core_type<tc>, window_params = [{transform_indices = @transform_0, window_bounds = array<i64: 1, 8, 64>}, {transform_indices = @transform_1, window_bounds = array<i64: 4, 64>}, {transform_indices = @transform_2, window_bounds = array<i64: 1, 64>}, {transform_indices = @transform_3, window_bounds = array<i64: 1, 8, 64>}]} {
    %c0_i32 = arith.constant 0 : i32
    %0 = arith.cmpi eq, %arg2, %c0_i32 : i32
    %1 = arith.extui %0 : i1 to i32
    %c0_i32_0 = arith.constant 0 : i32
    %2 = arith.cmpi ne, %1, %c0_i32_0 : i32
    scf.if %2 {
      %cst_14 = arith.constant 0.000000e+00 : f32
      %42 = vector.broadcast %cst_14 : f32 to vector<3x64xf32>
      %c0_15 = arith.constant 0 : index
      %c0_16 = arith.constant 0 : index
      %43 = vector.load %arg7[%c0_15, %c0_16] : memref<3x64xf32, #tpu.memory_space<vmem>>, vector<3x64xf32>
      tpu.vector_store %arg7[%c0_15, %c0_16], %42 {strides = array<i32>} : memref<3x64xf32, #tpu.memory_space<vmem>>, vector<3x64xf32>,
    } else {
    }
    %c0 = arith.constant 0 : index
    %c0_1 = arith.constant 0 : index
    %c0_2 = arith.constant 0 : index
    %3 = vector.load %arg3[%c0, %c0_1, %c0_2] : memref<1x8x64xbf16, #tpu.memory_space<vmem>>, vector<1x8x64xbf16>
    %4 = vector.shape_cast %3 : vector<1x8x64xbf16> to vector<8x64xbf16>
    %5 = arith.extf %4 : vector<8x64xbf16> to vector<8x64xf32>
    %c0_3 = arith.constant 0 : index
    %c0_4 = arith.constant 0 : index
    %6 = vector.load %arg4[%c0_3, %c0_4] : memref<4x64xf32, #tpu.memory_space<vmem>>, vector<4x64xf32>
    %c0_5 = arith.constant 0 : index
    %c0_6 = arith.constant 0 : index
    %7 = vector.load %arg7[%c0_5, %c0_6] : memref<3x64xf32, #tpu.memory_space<vmem>>, vector<3x64xf32>
    %8 = tpu.concatenate %7, %5 in 0 : vector<3x64xf32>, vector<8x64xf32> -> vector<11x64xf32>
    %c0_7 = arith.constant 0 : index
    %c0_8 = arith.constant 0 : index
    %9 = vector.load %arg5[%c0_7, %c0_8] : memref<1x64xf32, #tpu.memory_space<vmem>>, vector<1x64xf32>
    %10 = vector.extract_strided_slice %6 {offsets = [3, 0], sizes = [1, 64], strides = [1, 1]} : vector<4x64xf32> to vector<1x64xf32>
    %11 = vector.broadcast %10 : vector<1x64xf32> to vector<8x64xf32>
    %12 = arith.mulf %5, %11 : vector<8x64xf32>
    %13 = vector.broadcast %9 : vector<1x64xf32> to vector<8x64xf32>
    %14 = arith.addf %13, %12 : vector<8x64xf32>
    %15 = vector.extract_strided_slice %8 {offsets = [0, 0], sizes = [8, 64], strides = [1, 1]} : vector<11x64xf32> to vector<8x64xf32>
    %16 = vector.extract_strided_slice %6 {offsets = [0, 0], sizes = [1, 64], strides = [1, 1]} : vector<4x64xf32> to vector<1x64xf32>
    %17 = vector.broadcast %16 : vector<1x64xf32> to vector<8x64xf32>
    %18 = arith.mulf %15, %17 : vector<8x64xf32>
    %19 = arith.addf %14, %18 : vector<8x64xf32>
    %20 = vector.extract_strided_slice %8 {offsets = [1, 0], sizes = [8, 64], strides = [1, 1]} : vector<11x64xf32> to vector<8x64xf32>
    %21 = vector.extract_strided_slice %6 {offsets = [1, 0], sizes = [1, 64], strides = [1, 1]} : vector<4x64xf32> to vector<1x64xf32>
    %22 = vector.broadcast %21 : vector<1x64xf32> to vector<8x64xf32>
    %23 = arith.mulf %20, %22 : vector<8x64xf32>
    %24 = arith.addf %19, %23 : vector<8x64xf32>
    %25 = vector.extract_strided_slice %8 {offsets = [2, 0], sizes = [8, 64], strides = [1, 1]} : vector<11x64xf32> to vector<8x64xf32>
    %26 = vector.extract_strided_slice %6 {offsets = [2, 0], sizes = [1, 64], strides = [1, 1]} : vector<4x64xf32> to vector<1x64xf32>
    %27 = vector.broadcast %26 : vector<1x64xf32> to vector<8x64xf32>
    %28 = arith.mulf %25, %27 : vector<8x64xf32>
    %29 = arith.addf %24, %28 : vector<8x64xf32>
    %30 = vector.extract_strided_slice %5 {offsets = [5, 0], sizes = [3, 64], strides = [1, 1]} : vector<8x64xf32> to vector<3x64xf32>
    %c0_9 = arith.constant 0 : index
    %c0_10 = arith.constant 0 : index
    %31 = vector.load %arg7[%c0_9, %c0_10] : memref<3x64xf32, #tpu.memory_space<vmem>>, vector<3x64xf32>
    tpu.vector_store %arg7[%c0_9, %c0_10], %30 {strides = array<i32>} : memref<3x64xf32, #tpu.memory_space<vmem>>, vector<3x64xf32>,
    %32 = arith.negf %29 : vector<8x64xf32>
    %33 = math.exp %32 : vector<8x64xf32>
    %cst = arith.constant 1.000000e+00 : f32
    %34 = vector.broadcast %cst : f32 to vector<8x64xf32>
    %35 = arith.addf %34, %33 : vector<8x64xf32>
    %36 = arith.divf %34, %35 : vector<8x64xf32>
    %37 = arith.mulf %29, %36 : vector<8x64xf32>
    %38 = arith.truncf %37 : vector<8x64xf32> to vector<8x64xbf16>
    %c0_11 = arith.constant 0 : index
    %c0_12 = arith.constant 0 : index
    %c0_13 = arith.constant 0 : index
    %39 = vector.load %arg6[%c0_11, %c0_12, %c0_13] : memref<1x8x64xbf16, #tpu.memory_space<vmem>>, vector<1x8x64xbf16>
    %40 = vector.shape_cast %39 : vector<1x8x64xbf16> to vector<8x64xbf16>
    %41 = vector.shape_cast %38 : vector<8x64xbf16> to vector<1x8x64xbf16>
    tpu.vector_store %arg6[%c0_11, %c0_12, %c0_13], %41 {strides = array<i32>} : memref<1x8x64xbf16, #tpu.memory_space<vmem>>, vector<1x8x64xbf16>,
    return
  }
  func.func @transform_0(%arg0: i32, %arg1: i32, %arg2: i32) -> (i32, i32, i32) {
    %c0_i32 = arith.constant 0 : i32
    return %arg0, %arg2, %arg1 : i32, i32, i32
  }
  func.func @transform_1(%arg0: i32, %arg1: i32, %arg2: i32) -> (i32, i32) {
    %c0_i32 = arith.constant 0 : i32
    %c0_i32_0 = arith.constant 0 : i32
    return %c0_i32, %arg1 : i32, i32
  }
  func.func @transform_2(%arg0: i32, %arg1: i32, %arg2: i32) -> (i32, i32) {
    %c0_i32 = arith.constant 0 : i32
    %c0_i32_0 = arith.constant 0 : i32
    return %c0_i32, %arg1 : i32, i32
  }
  func.func @transform_3(%arg0: i32, %arg1: i32, %arg2: i32) -> (i32, i32, i32) {
    %c0_i32 = arith.constant 0 : i32
    return %arg0, %arg2, %arg1 : i32, i32, i32
  }
}

module attributes {stable_mosaic.version = 11 : i64} {
  func.func @_matmul_kernel(%arg0: i32, %arg1: i32, %arg2: i32, %arg3: memref<16x64xbf16, #tpu.memory_space<vmem>>, %arg4: memref<64x34xbf16, #tpu.memory_space<vmem>>, %arg5: memref<16x34xf32, #tpu.memory_space<vmem>>, %arg6: memref<16x34xf32, #tpu.memory_space<vmem>>) attributes {dimension_semantics = [#tpu.dimension_semantics<parallel>, #tpu.dimension_semantics<parallel>, #tpu.dimension_semantics<arbitrary>], iteration_bounds = array<i64: 1, 1, 1>, scalar_prefetch = 0 : i64, scratch_operands = 1 : i64, tpu.core_type = #tpu.core_type<tc>, window_params = [{transform_indices = @transform_0, window_bounds = array<i64: 16, 64>}, {transform_indices = @transform_1, window_bounds = array<i64: 64, 34>}, {transform_indices = @transform_2, window_bounds = array<i64: 16, 34>}]} {
    %c0_i32 = arith.constant 0 : i32
    %0 = arith.cmpi eq, %arg2, %c0_i32 : i32
    %1 = arith.extui %0 : i1 to i32
    %c0_i32_0 = arith.constant 0 : i32
    %2 = arith.cmpi ne, %1, %c0_i32_0 : i32
    scf.if %2 {
      %cst_10 = arith.constant 0.000000e+00 : f32
      %12 = vector.broadcast %cst_10 : f32 to vector<16x34xf32>
      %c0_11 = arith.constant 0 : index
      %c0_12 = arith.constant 0 : index
      %13 = vector.load %arg6[%c0_11, %c0_12] : memref<16x34xf32, #tpu.memory_space<vmem>>, vector<16x34xf32>
      tpu.vector_store %arg6[%c0_11, %c0_12], %12 {strides = array<i32>} : memref<16x34xf32, #tpu.memory_space<vmem>>, vector<16x34xf32>,
    } else {
    }
    %c0 = arith.constant 0 : index
    %c0_1 = arith.constant 0 : index
    %3 = vector.load %arg6[%c0, %c0_1] : memref<16x34xf32, #tpu.memory_space<vmem>>, vector<16x34xf32>
    %c0_2 = arith.constant 0 : index
    %c0_3 = arith.constant 0 : index
    %4 = vector.load %arg3[%c0_2, %c0_3] : memref<16x64xbf16, #tpu.memory_space<vmem>>, vector<16x64xbf16>
    %c0_4 = arith.constant 0 : index
    %c0_5 = arith.constant 0 : index
    %5 = vector.load %arg4[%c0_4, %c0_5] : memref<64x34xbf16, #tpu.memory_space<vmem>>, vector<64x34xbf16>
    %cst = arith.constant dense<0.000000e+00> : vector<16x34xf32>
    %6 = tpu.matmul %4, %5, %cst {dimension_numbers = #tpu.dot_dimension_numbers<[1], [0], [0], [1], [0, 0, 1, 1], [], []>} : vector<16x64xbf16>, vector<64x34xbf16>, vector<16x34xf32> -> vector<16x34xf32>
    %7 = arith.addf %3, %6 : vector<16x34xf32>
    %c0_6 = arith.constant 0 : index
    %c0_7 = arith.constant 0 : index
    %8 = vector.load %arg6[%c0_6, %c0_7] : memref<16x34xf32, #tpu.memory_space<vmem>>, vector<16x34xf32>
    tpu.vector_store %arg6[%c0_6, %c0_7], %7 {strides = array<i32>} : memref<16x34xf32, #tpu.memory_space<vmem>>, vector<16x34xf32>,
    %c0_i32_8 = arith.constant 0 : i32
    %9 = arith.cmpi eq, %arg2, %c0_i32_8 : i32
    %10 = arith.extui %9 : i1 to i32
    %c0_i32_9 = arith.constant 0 : i32
    %11 = arith.cmpi ne, %10, %c0_i32_9 : i32
    scf.if %11 {
      %c0_10 = arith.constant 0 : index
      %c0_11 = arith.constant 0 : index
      %12 = vector.load %arg6[%c0_10, %c0_11] : memref<16x34xf32, #tpu.memory_space<vmem>>, vector<16x34xf32>
      %c0_12 = arith.constant 0 : index
      %c0_13 = arith.constant 0 : index
      %13 = vector.load %arg5[%c0_12, %c0_13] : memref<16x34xf32, #tpu.memory_space<vmem>>, vector<16x34xf32>
      tpu.vector_store %arg5[%c0_12, %c0_13], %12 {strides = array<i32>} : memref<16x34xf32, #tpu.memory_space<vmem>>, vector<16x34xf32>,
    } else {
    }
    return
  }
  func.func @transform_0(%arg0: i32, %arg1: i32, %arg2: i32) -> (i32, i32) {
    %c0_i32 = arith.constant 0 : i32
    return %arg0, %arg2 : i32, i32
  }
  func.func @transform_1(%arg0: i32, %arg1: i32, %arg2: i32) -> (i32, i32) {
    %c0_i32 = arith.constant 0 : i32
    return %arg2, %arg1 : i32, i32
  }
  func.func @transform_2(%arg0: i32, %arg1: i32, %arg2: i32) -> (i32, i32) {
    %c0_i32 = arith.constant 0 : i32
    return %arg0, %arg1 : i32, i32
  }
}

module attributes {stable_mosaic.version = 11 : i64} {
  func.func @_matmul_kernel(%arg0: i32, %arg1: i32, %arg2: i32, %arg3: memref<16x64xbf16, #tpu.memory_space<vmem>>, %arg4: memref<64x32xbf16, #tpu.memory_space<vmem>>, %arg5: memref<16x32xf32, #tpu.memory_space<vmem>>, %arg6: memref<16x32xf32, #tpu.memory_space<vmem>>) attributes {dimension_semantics = [#tpu.dimension_semantics<parallel>, #tpu.dimension_semantics<parallel>, #tpu.dimension_semantics<arbitrary>], iteration_bounds = array<i64: 1, 1, 1>, scalar_prefetch = 0 : i64, scratch_operands = 1 : i64, tpu.core_type = #tpu.core_type<tc>, window_params = [{transform_indices = @transform_0, window_bounds = array<i64: 16, 64>}, {transform_indices = @transform_1, window_bounds = array<i64: 64, 32>}, {transform_indices = @transform_2, window_bounds = array<i64: 16, 32>}]} {
    %c0_i32 = arith.constant 0 : i32
    %0 = arith.cmpi eq, %arg2, %c0_i32 : i32
    %1 = arith.extui %0 : i1 to i32
    %c0_i32_0 = arith.constant 0 : i32
    %2 = arith.cmpi ne, %1, %c0_i32_0 : i32
    scf.if %2 {
      %cst_10 = arith.constant 0.000000e+00 : f32
      %12 = vector.broadcast %cst_10 : f32 to vector<16x32xf32>
      %c0_11 = arith.constant 0 : index
      %c0_12 = arith.constant 0 : index
      %13 = vector.load %arg6[%c0_11, %c0_12] : memref<16x32xf32, #tpu.memory_space<vmem>>, vector<16x32xf32>
      tpu.vector_store %arg6[%c0_11, %c0_12], %12 {strides = array<i32>} : memref<16x32xf32, #tpu.memory_space<vmem>>, vector<16x32xf32>,
    } else {
    }
    %c0 = arith.constant 0 : index
    %c0_1 = arith.constant 0 : index
    %3 = vector.load %arg6[%c0, %c0_1] : memref<16x32xf32, #tpu.memory_space<vmem>>, vector<16x32xf32>
    %c0_2 = arith.constant 0 : index
    %c0_3 = arith.constant 0 : index
    %4 = vector.load %arg3[%c0_2, %c0_3] : memref<16x64xbf16, #tpu.memory_space<vmem>>, vector<16x64xbf16>
    %c0_4 = arith.constant 0 : index
    %c0_5 = arith.constant 0 : index
    %5 = vector.load %arg4[%c0_4, %c0_5] : memref<64x32xbf16, #tpu.memory_space<vmem>>, vector<64x32xbf16>
    %cst = arith.constant dense<0.000000e+00> : vector<16x32xf32>
    %6 = tpu.matmul %4, %5, %cst {dimension_numbers = #tpu.dot_dimension_numbers<[1], [0], [0], [1], [0, 0, 1, 1], [], []>} : vector<16x64xbf16>, vector<64x32xbf16>, vector<16x32xf32> -> vector<16x32xf32>
    %7 = arith.addf %3, %6 : vector<16x32xf32>
    %c0_6 = arith.constant 0 : index
    %c0_7 = arith.constant 0 : index
    %8 = vector.load %arg6[%c0_6, %c0_7] : memref<16x32xf32, #tpu.memory_space<vmem>>, vector<16x32xf32>
    tpu.vector_store %arg6[%c0_6, %c0_7], %7 {strides = array<i32>} : memref<16x32xf32, #tpu.memory_space<vmem>>, vector<16x32xf32>,
    %c0_i32_8 = arith.constant 0 : i32
    %9 = arith.cmpi eq, %arg2, %c0_i32_8 : i32
    %10 = arith.extui %9 : i1 to i32
    %c0_i32_9 = arith.constant 0 : i32
    %11 = arith.cmpi ne, %10, %c0_i32_9 : i32
    scf.if %11 {
      %c0_10 = arith.constant 0 : index
      %c0_11 = arith.constant 0 : index
      %12 = vector.load %arg6[%c0_10, %c0_11] : memref<16x32xf32, #tpu.memory_space<vmem>>, vector<16x32xf32>
      %c0_12 = arith.constant 0 : index
      %c0_13 = arith.constant 0 : index
      %13 = vector.load %arg5[%c0_12, %c0_13] : memref<16x32xf32, #tpu.memory_space<vmem>>, vector<16x32xf32>
      tpu.vector_store %arg5[%c0_12, %c0_13], %12 {strides = array<i32>} : memref<16x32xf32, #tpu.memory_space<vmem>>, vector<16x32xf32>,
    } else {
    }
    return
  }
  func.func @transform_0(%arg0: i32, %arg1: i32, %arg2: i32) -> (i32, i32) {
    %c0_i32 = arith.constant 0 : i32
    return %arg0, %arg2 : i32, i32
  }
  func.func @transform_1(%arg0: i32, %arg1: i32, %arg2: i32) -> (i32, i32) {
    %c0_i32 = arith.constant 0 : i32
    return %arg2, %arg1 : i32, i32
  }
  func.func @transform_2(%arg0: i32, %arg1: i32, %arg2: i32) -> (i32, i32) {
    %c0_i32 = arith.constant 0 : i32
    return %arg0, %arg1 : i32, i32
  }
}

module attributes {stable_mosaic.version = 11 : i64} {
  func.func @_selective_scan_kernel(%arg0: i32, %arg1: i32, %arg2: i32, %arg3: memref<1x8x64xbf16, #tpu.memory_space<vmem>>, %arg4: memref<1x8x2xf32, #tpu.memory_space<vmem>>, %arg5: memref<1x8x32xf32, #tpu.memory_space<vmem>>, %arg6: memref<1x8x64xbf16, #tpu.memory_space<vmem>>, %arg7: memref<16x64xf32, #tpu.memory_space<vmem>>, %arg8: memref<2x64xf32, #tpu.memory_space<vmem>>, %arg9: memref<1x64xf32, #tpu.memory_space<vmem>>, %arg10: memref<1x64xf32, #tpu.memory_space<vmem>>, %arg11: memref<1x8x64xbf16, #tpu.memory_space<vmem>>, %arg12: memref<16x64xf32, #tpu.memory_space<vmem>>, %arg13: memref<8x16x64xf32, #tpu.memory_space<vmem>>, %arg14: memref<8x16x64xf32, #tpu.memory_space<vmem>>, %arg15: memref<8x16x64xbf16, #tpu.memory_space<vmem>>) attributes {dimension_semantics = [#tpu.dimension_semantics<parallel>, #tpu.dimension_semantics<parallel>, #tpu.dimension_semantics<arbitrary>], iteration_bounds = array<i64: 2, 1, 1>, scalar_prefetch = 0 : i64, scratch_operands = 4 : i64, tpu.core_type = #tpu.core_type<tc>, window_params = [{transform_indices = @transform_0, window_bounds = array<i64: 1, 8, 64>}, {transform_indices = @transform_1, window_bounds = array<i64: 1, 8, 2>}, {transform_indices = @transform_2, window_bounds = array<i64: 1, 8, 32>}, {transform_indices = @transform_3, window_bounds = array<i64: 1, 8, 64>}, {transform_indices = @transform_4, window_bounds = array<i64: 16, 64>}, {transform_indices = @transform_5, window_bounds = array<i64: 2, 64>}, {transform_indices = @transform_6, window_bounds = array<i64: 1, 64>}, {transform_indices = @transform_7, window_bounds = array<i64: 1, 64>}, {transform_indices = @transform_8, window_bounds = array<i64: 1, 8, 64>}]} {
    %c0_i32 = arith.constant 0 : i32
    %0 = arith.cmpi eq, %arg2, %c0_i32 : i32
    %1 = arith.extui %0 : i1 to i32
    %c0_i32_0 = arith.constant 0 : i32
    %2 = arith.cmpi ne, %1, %c0_i32_0 : i32
    scf.if %2 {
      %cst_40 = arith.constant 0.000000e+00 : f32
      %75 = vector.broadcast %cst_40 : f32 to vector<16x64xf32>
      %c0_41 = arith.constant 0 : index
      %c0_42 = arith.constant 0 : index
      %76 = vector.load %arg12[%c0_41, %c0_42] : memref<16x64xf32, #tpu.memory_space<vmem>>, vector<16x64xf32>
      tpu.vector_store %arg12[%c0_41, %c0_42], %75 {strides = array<i32>} : memref<16x64xf32, #tpu.memory_space<vmem>>, vector<16x64xf32>,
    } else {
    }
    %c0 = arith.constant 0 : index
    %c0_1 = arith.constant 0 : index
    %c0_2 = arith.constant 0 : index
    %3 = vector.load %arg3[%c0, %c0_1, %c0_2] : memref<1x8x64xbf16, #tpu.memory_space<vmem>>, vector<1x8x64xbf16>
    %4 = vector.shape_cast %3 : vector<1x8x64xbf16> to vector<8x64xbf16>
    %5 = arith.extf %4 : vector<8x64xbf16> to vector<8x64xf32>
    %c0_3 = arith.constant 0 : index
    %c0_4 = arith.constant 0 : index
    %c0_5 = arith.constant 0 : index
    %6 = vector.load %arg6[%c0_3, %c0_4, %c0_5] : memref<1x8x64xbf16, #tpu.memory_space<vmem>>, vector<1x8x64xbf16>
    %7 = vector.shape_cast %6 : vector<1x8x64xbf16> to vector<8x64xbf16>
    %8 = arith.extf %7 : vector<8x64xbf16> to vector<8x64xf32>
    %c0_6 = arith.constant 0 : index
    %c0_7 = arith.constant 0 : index
    %9 = vector.load %arg7[%c0_6, %c0_7] : memref<16x64xf32, #tpu.memory_space<vmem>>, vector<16x64xf32>
    %c0_8 = arith.constant 0 : index
    %c0_9 = arith.constant 0 : index
    %c0_10 = arith.constant 0 : index
    %10 = vector.load %arg4[%c0_8, %c0_9, %c0_10] : memref<1x8x2xf32, #tpu.memory_space<vmem>>, vector<1x8x2xf32>
    %11 = vector.shape_cast %10 : vector<1x8x2xf32> to vector<8x2xf32>
    %c0_11 = arith.constant 0 : index
    %c0_12 = arith.constant 0 : index
    %12 = vector.load %arg8[%c0_11, %c0_12] : memref<2x64xf32, #tpu.memory_space<vmem>>, vector<2x64xf32>
    %13 = vector.extract_strided_slice %11 {offsets = [0, 0], sizes = [8, 1], strides = [1, 1]} : vector<8x2xf32> to vector<8x1xf32>
    %14 = vector.extract_strided_slice %12 {offsets = [0, 0], sizes = [1, 64], strides = [1, 1]} : vector<2x64xf32> to vector<1x64xf32>
    %15 = vector.broadcast %13 : vector<8x1xf32> to vector<8x64xf32>
    %16 = vector.broadcast %14 : vector<1x64xf32> to vector<8x64xf32>
    %17 = arith.mulf %15, %16 : vector<8x64xf32>
    %18 = vector.extract_strided_slice %11 {offsets = [0, 1], sizes = [8, 1], strides = [1, 1]} : vector<8x2xf32> to vector<8x1xf32>
    %19 = vector.extract_strided_slice %12 {offsets = [1, 0], sizes = [1, 64], strides = [1, 1]} : vector<2x64xf32> to vector<1x64xf32>
    %20 = vector.broadcast %18 : vector<8x1xf32> to vector<8x64xf32>
    %21 = vector.broadcast %19 : vector<1x64xf32> to vector<8x64xf32>
    %22 = arith.mulf %20, %21 : vector<8x64xf32>
    %23 = arith.addf %17, %22 : vector<8x64xf32>
    %c0_13 = arith.constant 0 : index
    %c0_14 = arith.constant 0 : index
    %24 = vector.load %arg10[%c0_13, %c0_14] : memref<1x64xf32, #tpu.memory_space<vmem>>, vector<1x64xf32>
    %25 = vector.broadcast %24 : vector<1x64xf32> to vector<8x64xf32>
    %26 = arith.addf %23, %25 : vector<8x64xf32>
    %cst = arith.constant 2.000000e+01 : f32
    %27 = vector.broadcast %cst : f32 to vector<8x64xf32>
    %28 = arith.cmpf ogt, %26, %27 : vector<8x64xf32>
    %29 = math.exp %26 : vector<8x64xf32>
    %30 = math.log1p %29 : vector<8x64xf32>
    %31 = arith.select %28, %26, %30 : vector<8x64xi1>, vector<8x64xf32>
    %c0_15 = arith.constant 0 : index
    %c0_16 = arith.constant 0 : index
    %c0_17 = arith.constant 0 : index
    %32 = vector.load %arg5[%c0_15, %c0_16, %c0_17] : memref<1x8x32xf32, #tpu.memory_space<vmem>>, vector<1x8x32xf32>
    %33 = vector.shape_cast %32 : vector<1x8x32xf32> to vector<8x32xf32>
    %34 = vector.extract_strided_slice %33 {offsets = [0, 0], sizes = [8, 16], strides = [1, 1]} : vector<8x32xf32> to vector<8x16xf32>
    %35 = vector.extract_strided_slice %33 {offsets = [0, 16], sizes = [8, 16], strides = [1, 1]} : vector<8x32xf32> to vector<8x16xf32>
    %36 = vector.shape_cast %31 : vector<8x64xf32> to vector<8x1x64xf32>
    %37 = vector.shape_cast %9 : vector<16x64xf32> to vector<1x16x64xf32>
    %38 = vector.broadcast %36 : vector<8x1x64xf32> to vector<8x16x64xf32>
    %39 = vector.broadcast %37 : vector<1x16x64xf32> to vector<8x16x64xf32>
    %40 = arith.mulf %38, %39 : vector<8x16x64xf32>
    %41 = math.exp %40 : vector<8x16x64xf32>
    %c0_18 = arith.constant 0 : index
    %c0_19 = arith.constant 0 : index
    %c0_20 = arith.constant 0 : index
    %42 = vector.load %arg13[%c0_18, %c0_19, %c0_20] : memref<8x16x64xf32, #tpu.memory_space<vmem>>, vector<8x16x64xf32>
    tpu.vector_store %arg13[%c0_18, %c0_19, %c0_20], %41 {strides = array<i32>} : memref<8x16x64xf32, #tpu.memory_space<vmem>>, vector<8x16x64xf32>,
    %43 = vector.shape_cast %34 : vector<8x16xf32> to vector<8x16x1xf32>
    %44 = arith.mulf %31, %5 : vector<8x64xf32>
    %45 = vector.shape_cast %44 : vector<8x64xf32> to vector<8x1x64xf32>
    %46 = vector.broadcast %43 : vector<8x16x1xf32> to vector<8x16x64xf32>
    %47 = vector.broadcast %45 : vector<8x1x64xf32> to vector<8x16x64xf32>
    %48 = arith.mulf %46, %47 : vector<8x16x64xf32>
    %c0_21 = arith.constant 0 : index
    %c0_22 = arith.constant 0 : index
    %c0_23 = arith.constant 0 : index
    %49 = vector.load %arg14[%c0_21, %c0_22, %c0_23] : memref<8x16x64xf32, #tpu.memory_space<vmem>>, vector<8x16x64xf32>
    tpu.vector_store %arg14[%c0_21, %c0_22, %c0_23], %48 {strides = array<i32>} : memref<8x16x64xf32, #tpu.memory_space<vmem>>, vector<8x16x64xf32>,
    %c0_24 = arith.constant 0 : index
    %c0_25 = arith.constant 0 : index
    %50 = vector.load %arg12[%c0_24, %c0_25] : memref<16x64xf32, #tpu.memory_space<vmem>>, vector<16x64xf32>
    %c0_i32_26 = arith.constant 0 : i32
    %c2_i32 = arith.constant 2 : i32
    %51 = arith.addi %c0_i32_26, %c2_i32 : i32
    %c1_i32 = arith.constant 1 : i32
    %52 = scf.for %arg16 = %c0_i32_26 to %51 step %c1_i32 iter_args(%arg17 = %50) -> (vector<16x64xf32>)  : i32 {
      %c4_i32 = arith.constant 4 : i32
      %75 = arith.muli %arg16, %c4_i32 : i32
      %c0_i32_40 = arith.constant 0 : i32
      %76 = arith.addi %75, %c0_i32_40 : i32
      %77 = arith.index_cast %76 : i32 to index
      %c0_41 = arith.constant 0 : index
      %c0_42 = arith.constant 0 : index
      %78 = vector.load %arg13[%77, %c0_41, %c0_42] : memref<8x16x64xf32, #tpu.memory_space<vmem>>, vector<1x16x64xf32>
      %79 = vector.shape_cast %78 : vector<1x16x64xf32> to vector<16x64xf32>
      %80 = arith.mulf %79, %arg17 : vector<16x64xf32>
      %81 = arith.index_cast %76 : i32 to index
      %c0_43 = arith.constant 0 : index
      %c0_44 = arith.constant 0 : index
      %82 = vector.load %arg14[%81, %c0_43, %c0_44] : memref<8x16x64xf32, #tpu.memory_space<vmem>>, vector<1x16x64xf32>
      %83 = vector.shape_cast %82 : vector<1x16x64xf32> to vector<16x64xf32>
      %84 = arith.addf %80, %83 : vector<16x64xf32>
      %85 = arith.truncf %84 : vector<16x64xf32> to vector<16x64xbf16>
      %86 = arith.index_cast %76 : i32 to index
      %c0_45 = arith.constant 0 : index
      %c0_46 = arith.constant 0 : index
      %87 = vector.load %arg15[%86, %c0_45, %c0_46] : memref<8x16x64xbf16, #tpu.memory_space<vmem>>, vector<1x16x64xbf16>
      %88 = vector.shape_cast %87 : vector<1x16x64xbf16> to vector<16x64xbf16>
      %89 = vector.shape_cast %85 : vector<16x64xbf16> to vector<1x16x64xbf16>
      tpu.vector_store %arg15[%86, %c0_45, %c0_46], %89 {strides = array<i32>} : memref<8x16x64xbf16, #tpu.memory_space<vmem>>, vector<1x16x64xbf16>,
      %c4_i32_47 = arith.constant 4 : i32
      %90 = arith.muli %arg16, %c4_i32_47 : i32
      %c1_i32_48 = arith.constant 1 : i32
      %91 = arith.addi %90, %c1_i32_48 : i32
      %92 = arith.index_cast %91 : i32 to index
      %c0_49 = arith.constant 0 : index
      %c0_50 = arith.constant 0 : index
      %93 = vector.load %arg13[%92, %c0_49, %c0_50] : memref<8x16x64xf32, #tpu.memory_space<vmem>>, vector<1x16x64xf32>
      %94 = vector.shape_cast %93 : vector<1x16x64xf32> to vector<16x64xf32>
      %95 = arith.mulf %94, %84 : vector<16x64xf32>
      %96 = arith.index_cast %91 : i32 to index
      %c0_51 = arith.constant 0 : index
      %c0_52 = arith.constant 0 : index
      %97 = vector.load %arg14[%96, %c0_51, %c0_52] : memref<8x16x64xf32, #tpu.memory_space<vmem>>, vector<1x16x64xf32>
      %98 = vector.shape_cast %97 : vector<1x16x64xf32> to vector<16x64xf32>
      %99 = arith.addf %95, %98 : vector<16x64xf32>
      %100 = arith.truncf %99 : vector<16x64xf32> to vector<16x64xbf16>
      %101 = arith.index_cast %91 : i32 to index
      %c0_53 = arith.constant 0 : index
      %c0_54 = arith.constant 0 : index
      %102 = vector.load %arg15[%101, %c0_53, %c0_54] : memref<8x16x64xbf16, #tpu.memory_space<vmem>>, vector<1x16x64xbf16>
      %103 = vector.shape_cast %102 : vector<1x16x64xbf16> to vector<16x64xbf16>
      %104 = vector.shape_cast %100 : vector<16x64xbf16> to vector<1x16x64xbf16>
      tpu.vector_store %arg15[%101, %c0_53, %c0_54], %104 {strides = array<i32>} : memref<8x16x64xbf16, #tpu.memory_space<vmem>>, vector<1x16x64xbf16>,
      %c4_i32_55 = arith.constant 4 : i32
      %105 = arith.muli %arg16, %c4_i32_55 : i32
      %c2_i32_56 = arith.constant 2 : i32
      %106 = arith.addi %105, %c2_i32_56 : i32
      %107 = arith.index_cast %106 : i32 to index
      %c0_57 = arith.constant 0 : index
      %c0_58 = arith.constant 0 : index
      %108 = vector.load %arg13[%107, %c0_57, %c0_58] : memref<8x16x64xf32, #tpu.memory_space<vmem>>, vector<1x16x64xf32>
      %109 = vector.shape_cast %108 : vector<1x16x64xf32> to vector<16x64xf32>
      %110 = arith.mulf %109, %99 : vector<16x64xf32>
      %111 = arith.index_cast %106 : i32 to index
      %c0_59 = arith.constant 0 : index
      %c0_60 = arith.constant 0 : index
      %112 = vector.load %arg14[%111, %c0_59, %c0_60] : memref<8x16x64xf32, #tpu.memory_space<vmem>>, vector<1x16x64xf32>
      %113 = vector.shape_cast %112 : vector<1x16x64xf32> to vector<16x64xf32>
      %114 = arith.addf %110, %113 : vector<16x64xf32>
      %115 = arith.truncf %114 : vector<16x64xf32> to vector<16x64xbf16>
      %116 = arith.index_cast %106 : i32 to index
      %c0_61 = arith.constant 0 : index
      %c0_62 = arith.constant 0 : index
      %117 = vector.load %arg15[%116, %c0_61, %c0_62] : memref<8x16x64xbf16, #tpu.memory_space<vmem>>, vector<1x16x64xbf16>
      %118 = vector.shape_cast %117 : vector<1x16x64xbf16> to vector<16x64xbf16>
      %119 = vector.shape_cast %115 : vector<16x64xbf16> to vector<1x16x64xbf16>
      tpu.vector_store %arg15[%116, %c0_61, %c0_62], %119 {strides = array<i32>} : memref<8x16x64xbf16, #tpu.memory_space<vmem>>, vector<1x16x64xbf16>,
      %c4_i32_63 = arith.constant 4 : i32
      %120 = arith.muli %arg16, %c4_i32_63 : i32
      %c3_i32 = arith.constant 3 : i32
      %121 = arith.addi %120, %c3_i32 : i32
      %122 = arith.index_cast %121 : i32 to index
      %c0_64 = arith.constant 0 : index
      %c0_65 = arith.constant 0 : index
      %123 = vector.load %arg13[%122, %c0_64, %c0_65] : memref<8x16x64xf32, #tpu.memory_space<vmem>>, vector<1x16x64xf32>
      %124 = vector.shape_cast %123 : vector<1x16x64xf32> to vector<16x64xf32>
      %125 = arith.mulf %124, %114 : vector<16x64xf32>
      %126 = arith.index_cast %121 : i32 to index
      %c0_66 = arith.constant 0 : index
      %c0_67 = arith.constant 0 : index
      %127 = vector.load %arg14[%126, %c0_66, %c0_67] : memref<8x16x64xf32, #tpu.memory_space<vmem>>, vector<1x16x64xf32>
      %128 = vector.shape_cast %127 : vector<1x16x64xf32> to vector<16x64xf32>
      %129 = arith.addf %125, %128 : vector<16x64xf32>
      %130 = arith.truncf %129 : vector<16x64xf32> to vector<16x64xbf16>
      %131 = arith.index_cast %121 : i32 to index
      %c0_68 = arith.constant 0 : index
      %c0_69 = arith.constant 0 : index
      %132 = vector.load %arg15[%131, %c0_68, %c0_69] : memref<8x16x64xbf16, #tpu.memory_space<vmem>>, vector<1x16x64xbf16>
      %133 = vector.shape_cast %132 : vector<1x16x64xbf16> to vector<16x64xbf16>
      %134 = vector.shape_cast %130 : vector<16x64xbf16> to vector<1x16x64xbf16>
      tpu.vector_store %arg15[%131, %c0_68, %c0_69], %134 {strides = array<i32>} : memref<8x16x64xbf16, #tpu.memory_space<vmem>>, vector<1x16x64xbf16>,
      scf.yield %129 : vector<16x64xf32>
    }
    %c2_i32_27 = arith.constant 2 : i32
    %c0_28 = arith.constant 0 : index
    %c0_29 = arith.constant 0 : index
    %53 = vector.load %arg12[%c0_28, %c0_29] : memref<16x64xf32, #tpu.memory_space<vmem>>, vector<16x64xf32>
    tpu.vector_store %arg12[%c0_28, %c0_29], %52 {strides = array<i32>} : memref<16x64xf32, #tpu.memory_space<vmem>>, vector<16x64xf32>,
    %54 = vector.shape_cast %35 : vector<8x16xf32> to vector<8x16x1xf32>
    %c0_30 = arith.constant 0 : index
    %c0_31 = arith.constant 0 : index
    %c0_32 = arith.constant 0 : index
    %55 = vector.load %arg15[%c0_30, %c0_31, %c0_32] : memref<8x16x64xbf16, #tpu.memory_space<vmem>>, vector<8x16x64xbf16>
    %56 = arith.extf %55 : vector<8x16x64xbf16> to vector<8x16x64xf32>
    %57 = vector.broadcast %54 : vector<8x16x1xf32> to vector<8x16x64xf32>
    %58 = arith.mulf %57, %56 : vector<8x16x64xf32>
    %cst_33 = arith.constant dense<0.000000e+00> : vector<8x64xf32>
    %59 = vector.multi_reduction <add>, %58, %cst_33 [1] : vector<8x16x64xf32> to vector<8x64xf32>
    %c0_34 = arith.constant 0 : index
    %c0_35 = arith.constant 0 : index
    %60 = vector.load %arg9[%c0_34, %c0_35] : memref<1x64xf32, #tpu.memory_space<vmem>>, vector<1x64xf32>
    %61 = vector.broadcast %60 : vector<1x64xf32> to vector<8x64xf32>
    %62 = arith.mulf %61, %5 : vector<8x64xf32>
    %63 = arith.addf %59, %62 : vector<8x64xf32>
    %64 = arith.negf %8 : vector<8x64xf32>
    %65 = math.exp %64 : vector<8x64xf32>
    %cst_36 = arith.constant 1.000000e+00 : f32
    %66 = vector.broadcast %cst_36 : f32 to vector<8x64xf32>
    %67 = arith.addf %66, %65 : vector<8x64xf32>
    %68 = arith.divf %66, %67 : vector<8x64xf32>
    %69 = arith.mulf %8, %68 : vector<8x64xf32>
    %70 = arith.mulf %63, %69 : vector<8x64xf32>
    %71 = arith.truncf %70 : vector<8x64xf32> to vector<8x64xbf16>
    %c0_37 = arith.constant 0 : index
    %c0_38 = arith.constant 0 : index
    %c0_39 = arith.constant 0 : index
    %72 = vector.load %arg11[%c0_37, %c0_38, %c0_39] : memref<1x8x64xbf16, #tpu.memory_space<vmem>>, vector<1x8x64xbf16>
    %73 = vector.shape_cast %72 : vector<1x8x64xbf16> to vector<8x64xbf16>
    %74 = vector.shape_cast %71 : vector<8x64xbf16> to vector<1x8x64xbf16>
    tpu.vector_store %arg11[%c0_37, %c0_38, %c0_39], %74 {strides = array<i32>} : memref<1x8x64xbf16, #tpu.memory_space<vmem>>, vector<1x8x64xbf16>,
    return
  }
  func.func @transform_0(%arg0: i32, %arg1: i32, %arg2: i32) -> (i32, i32, i32) {
    %c0_i32 = arith.constant 0 : i32
    return %arg0, %arg2, %arg1 : i32, i32, i32
  }
  func.func @transform_1(%arg0: i32, %arg1: i32, %arg2: i32) -> (i32, i32, i32) {
    %c0_i32 = arith.constant 0 : i32
    %c0_i32_0 = arith.constant 0 : i32
    return %arg0, %arg2, %c0_i32 : i32, i32, i32
  }
  func.func @transform_2(%arg0: i32, %arg1: i32, %arg2: i32) -> (i32, i32, i32) {
    %c0_i32 = arith.constant 0 : i32
    %c0_i32_0 = arith.constant 0 : i32
    return %arg0, %arg2, %c0_i32 : i32, i32, i32
  }
  func.func @transform_3(%arg0: i32, %arg1: i32, %arg2: i32) -> (i32, i32, i32) {
    %c0_i32 = arith.constant 0 : i32
    return %arg0, %arg2, %arg1 : i32, i32, i32
  }
  func.func @transform_4(%arg0: i32, %arg1: i32, %arg2: i32) -> (i32, i32) {
    %c0_i32 = arith.constant 0 : i32
    %c0_i32_0 = arith.constant 0 : i32
    return %c0_i32, %arg1 : i32, i32
  }
  func.func @transform_5(%arg0: i32, %arg1: i32, %arg2: i32) -> (i32, i32) {
    %c0_i32 = arith.constant 0 : i32
    %c0_i32_0 = arith.constant 0 : i32
    return %c0_i32, %arg1 : i32, i32
  }
  func.func @transform_6(%arg0: i32, %arg1: i32, %arg2: i32) -> (i32, i32) {
    %c0_i32 = arith.constant 0 : i32
    %c0_i32_0 = arith.constant 0 : i32
    return %c0_i32, %arg1 : i32, i32
  }
  func.func @transform_7(%arg0: i32, %arg1: i32, %arg2: i32) -> (i32, i32) {
    %c0_i32 = arith.constant 0 : i32
    %c0_i32_0 = arith.constant 0 : i32
    return %c0_i32, %arg1 : i32, i32
  }
  func.func @transform_8(%arg0: i32, %arg1: i32, %arg2: i32) -> (i32, i32, i32) {
    %c0_i32 = arith.constant 0 : i32
    return %arg0, %arg2, %arg1 : i32, i32, i32
  }
}

</mosaic_0001>

<bundles_post_ra>
// kernel: _lambda_.6
= control target key start
LH: loop header
LB: loop body
LE: loop exit
PB: predicated region body
PF: predicated region fallthrough
CT: control target
= control target key end

     0   :  { %8 = vsyncpa [#allocation3], 0  ;;  %s127_s12 = smov [#allocation2]   ;;  %s169_s0 = inlined_call_operand.hbm [shape: f32[16,32], index: 0, kind: input, shape index: {}]   ;;  %s170_s1 = inlined_call_operand.vmem [shape: f32[1,32], index: 1, kind: input, shape index: {}]   ;;  %s171_s2 = inlined_call_operand.vmem [shape: f32[1,32], index: 2, kind: input, shape index: {}]   ;;  %s172_s3 = inlined_call_operand.vmem [shape: bf16[16,32], index: 3, kind: output, shape index: {}]  }
   0x1   :  { %s14_s13 = sshll.u32 %s127_s12, 4  ;;  %s15_s13 = int_to_ptr.vmem [resolvable:$true] %s14_s13 }
   0x2   :  { %s113_s14 = scalar_lea.vmem %s15_s13, 256  ;;  %p118_p1 = scmp.lt.s32.totalorder %s15_s13, %s15_s13 }
   0x3   :  { %p114_p0 = scmp.ne.s32.totalorder %s15_s13, %s113_s14  ;;  %p119_p2 = scmp.lt.s32.totalorder %s113_s14, %s113_s14 }
   0x5   :  { %p120_p3 = por %p119_p2, %p118_p1 }
   0x7   :  { %p121_p4 = pnand %p120_p3, %p114_p0 }
   0x9   :  { %124 = shalt.err (!%p121_p4)
}
   0xa   :  { %s128_s15 = smov 128   ;;  %s129_s16 = smov 8  }
   0xb   :  { %20 = dma.hbm_to_vmem [thread:$0]  %s169_s0, 256, %s15_s13, [#allocation3], %s128_s15, %s128_s15, %s129_s16  }
   0xc   :  { %125 = dma.done.wait [#allocation3], 256  }
   0xd   :  { %126 = vsyncadd [#allocation3], 4294967040  ;;  %vm30_vm0 = vcmask 261120   ;;  %v28_v0 = vld [vmem:[#allocation2] sm:$0xff]  ;;  %v29_v1 = vld [vmem:[#allocation2 + $0x8] sm:$0xff]  ;;  %vm84_vm1 = vcmask 257024  }
   0xe   :  { %v31_v2 = vsel %vm30_vm0, %v28_v0, 0.0  ;;  %v34_v3 = vsel %vm30_vm0, %v29_v1, 0.0  ;;  %v92_v21 = vld [vmem:[%s170_s1] ss:$0 sm:$0xff] }
   0xf   :  { %32 = vadd.xlane.f32.xlu0 %v31_v2  ;;  %v93_v23 = vld [vmem:[%s171_s2] ss:$0 sm:$0xff] }
  0x13   :  { %35 = vadd.xlane.f32.xlu0 %v34_v3 }
  0x98   :  { %v33_v4 = vpop.xlane.xlu0 %32 }
  0x99   :  { %v38_v5 = vmul.f32 0.03125, %v33_v4 }
  0x9b   :  { %v40_v6 = vsub.f32 %v28_v0, %v38_v5 }
  0x9c   :  { %v36_v7 = vpop.xlane.xlu0 %35 }
  0x9d   :  { %v39_v8 = vmul.f32 0.03125, %v36_v7  ;;  %v42_v9 = vmul.f32 %v40_v6, %v40_v6 }
  0x9f   :  { %v41_v10 = vsub.f32 %v29_v1, %v39_v8  ;;  %v44_v11 = vsel %vm30_vm0, %v42_v9, 0.0 }
  0xa0   :  { %45 = vadd.xlane.f32.xlu1 %v44_v11 }
  0xa1   :  { %v43_v12 = vmul.f32 %v41_v10, %v41_v10 }
  0xa3   :  { %v47_v13 = vsel %vm30_vm0, %v43_v12, 0.0 }
  0xa4   :  { %48 = vadd.xlane.f32.xlu1 %v47_v13 }
 0x129   :  { %v46_v14 = vpop.xlane.xlu1 %45 }
 0x12a   :  { %v50_v15 = vmul.f32 0.03125, %v46_v14 }
 0x12c   :  { %v52_v16 = vadd.f32 1e-05, %v50_v15 }
 0x12d   :  { %v49_v17 = vpop.xlane.xlu1 %48 }
 0x12e   :  { %101 = vrsqrt.f32 %v52_v16  ;;  %v51_v18 = vmul.f32 0.03125, %v49_v17 }
 0x130   :  { %v53_v19 = vadd.f32 1e-05, %v51_v18 }
 0x132   :  { %103 = vrsqrt.f32 %v53_v19 }
 0x13b   :  { %v102_v20 = vpop.eup %101 }
 0x13c   :  { %v56_v22 = vmul.f32 %v102_v20, %v40_v6 }
 0x13e   :  { %v65_v24 = vmul.f32 %v92_v21, %v56_v22 }
 0x13f   :  { %v104_v25 = vpop.eup %103 }
 0x140   :  { %v74_v26 = vadd.f32 %v93_v23, %v65_v24  ;;  %v57_v27 = vmul.f32 %v104_v25, %v41_v10 }
 0x142   :  { %v96_v28 = vpack.c.bf16 %v74_v26, %v74_v26  ;;  %v66_v29 = vmul.f32 %v92_v21, %v57_v27 }
 0x144   :  { %85 = vst.msk [vmem:[%s172_s3] sm:$0xf] %vm84_vm1, %v96_v28  ;;  %v75_v30 = vadd.f32 %v93_v23, %v66_v29 }
 0x146   :  { %v97_v31 = vpack.c.bf16 %v75_v30, %v75_v30 }
 0x148   :  { %86 = vst.msk [vmem:[%s172_s3 + $0x4] sm:$0xf] %vm84_vm1, %v97_v31 }
 0x149   :  { %91 = vsyncpa [#allocation3], 1 }

// kernel: _lambda_.7
= control target key start
LH: loop header
LB: loop body
LE: loop exit
PB: predicated region body
PF: predicated region fallthrough
CT: control target
= control target key end

     0   :  { %vm21_vm0 = vcmask 523264   ;;  %v244_v0 = vmov 0.0   ;;  %vm245_vm1 = vmmov 0   ;;  %vm51_vm2 = vcmask 261120   ;;  %s306_s1 = inlined_call_operand.vmem [shape: bf16[32,64], index: 1, kind: input, shape index: {}]   ;;  %s307_s2 = inlined_call_operand.vmem [shape: bf16[32,64], index: 2, kind: input, shape index: {}]   ;;  %s308_s0 = inlined_call_operand.vmem [shape: bf16[16,32], index: 0, kind: input, shape index: {}]   ;;  %s309_s3 = inlined_call_operand.vmem [shape: bf16[16,64], index: 3, kind: output, shape index: {0}]   ;;  %s310_s4 = inlined_call_operand.vmem [shape: bf16[16,64], index: 4, kind: output, shape index: {1}]  }
   0x1   :  { %221 = vmatprep.subr.bf16.mxu0 %v244_v0  ;;  %229 = vmatprep.subr.bf16.mxu1 %v244_v0  ;;  %v239_v1 = vld [vmem:[%s306_s1 + $0x8] sm:$0xff]   ;;  %22 = vst.msk [vmem:[#allocation2] sm:$0xff] %vm21_vm0, %v244_v0  ;;  %23 = vst.msk [vmem:[#allocation2 + $0x8] sm:$0xff] %vm21_vm0, %v244_v0  ;;  %v241_v3 = vld [vmem:[%s306_s1] sm:$0xff]   ;;  %vm177_vm3 = vcmask 519168  }
   0x2   :  { %24 = vst.msk [vmem:[#allocation3] sm:$0xff] %vm21_vm0, %v244_v0  ;;  %25 = vst.msk [vmem:[#allocation3 + $0x8] sm:$0xff] %vm21_vm0, %v244_v0  ;;  %v240_v2 = vld [vmem:[%s307_s2 + $0x8] sm:$0xff]   ;;  %225 = vmatprep.mubr.msk.bf16.mxu0 %vm245_vm1, %v244_v0  ;;  %233 = vmatprep.mubr.msk.bf16.mxu1 %vm245_vm1, %v244_v0  ;;  %v242_v4 = vld [vmem:[%s307_s2] sm:$0xff]  }
   0x3   :  { %222 = vmatpush3.bf16.msra.mxu0 %v239_v1  ;;  %230 = vmatpush3.bf16.msra.mxu1 %v240_v2  ;;  %v243_v5 = vld [vmem:[%s308_s0] sm:$0xff]  }
   0x4   :  { %223 = vmatprep.subr.bf16.mxu0 %v244_v0  ;;  %231 = vmatprep.subr.bf16.mxu1 %v244_v0 }
   0x7   :  { %224 = vmatpush3.bf16.msra.mxu0 %v241_v3  ;;  %232 = vmatpush3.bf16.msra.mxu1 %v242_v4 }
   0x8   :  { %v28_v6 = vld [vmem:[#allocation2] sm:$0xff]  ;;  %v29_v13 = vld [vmem:[#allocation2 + $0x8] sm:$0xff] }
   0x9   :  { %v101_v7 = vld [vmem:[#allocation3] sm:$0xff]  ;;  %v102_v15 = vld [vmem:[#allocation3 + $0x8] sm:$0xff] }
   0xa   :  { %226 = vmatmul.mubr.msk.bf16.vlgmr.msra.gmra.mxu0 %vm51_vm2, %v243_v5  ;;  %234 = vmatmul.mubr.msk.bf16.vlgmr.msra.gmra.mxu1 %vm51_vm2, %v243_v5 }
  0xca   :  { %v89_v8 = vpop.f32.mrf.mxu0  ;;  %v153_v10 = vpop.f32.mrf.mxu1 }
  0xcb   :  { %v96_v9 = vadd.f32 %v89_v8, %v28_v6  ;;  %v160_v11 = vadd.f32 %v153_v10, %v101_v7 }
  0xcc   :  { %v227_v12 = vpop.f32.mrf.mxu0  ;;  %v235_v14 = vpop.f32.mrf.mxu1 }
  0xcd   :  { %99 = vst.msk [vmem:[#allocation2] sm:$0xff] %vm21_vm0, %v96_v9  ;;  %162 = vst.msk [vmem:[#allocation3] sm:$0xff] %vm21_vm0, %v160_v11 }
  0xce   :  { %v92_v16 = vpop.f32.mrf.mxu0  ;;  %v156_v18 = vpop.f32.mrf.mxu1 }
  0xcf   :  { %v97_v17 = vadd.f32 %v92_v16, %v29_v13  ;;  %v161_v19 = vadd.f32 %v156_v18, %v102_v15 }
  0xd0   :  { %v228_v20 = vpop.f32.mrf.mxu0  ;;  %v236_v21 = vpop.f32.mrf.mxu1 }
  0xd1   :  { %100 = vst.msk [vmem:[#allocation2 + $0x8] sm:$0xff] %vm21_vm0, %v97_v17  ;;  %163 = vst.msk [vmem:[#allocation3 + $0x8] sm:$0xff] %vm21_vm0, %v161_v19 }
  0xd4   :  { %v167_v22 = vld [vmem:[#allocation2] sm:$0xff]  ;;  %v180_v24 = vld [vmem:[#allocation3] sm:$0xff] }
  0xd5   :  { %v211_v23 = vpack.c.bf16 %v167_v22, %v167_v22  ;;  %v213_v25 = vpack.c.bf16 %v180_v24, %v180_v24 }
  0xd7   :  { %178 = vst.msk [vmem:[%s309_s3] sm:$0xf] %vm177_vm3, %v211_v23  ;;  %190 = vst.msk [vmem:[%s310_s4] sm:$0xf] %vm177_vm3, %v213_v25 }
  0xd8   :  { %v168_v26 = vld [vmem:[#allocation2 + $0x8] sm:$0xff]  ;;  %v181_v28 = vld [vmem:[#allocation3 + $0x8] sm:$0xff] }
  0xd9   :  { %v212_v27 = vpack.c.bf16 %v168_v26, %v168_v26  ;;  %v214_v29 = vpack.c.bf16 %v181_v28, %v181_v28 }
  0xdb   :  { %179 = vst.msk [vmem:[%s309_s3 + $0x4] sm:$0xf] %vm177_vm3, %v212_v27  ;;  %191 = vst.msk [vmem:[%s310_s4 + $0x4] sm:$0xf] %vm177_vm3, %v214_v29 }

// kernel: _lambda_.8
= control target key start
LH: loop header
LB: loop body
LE: loop exit
PB: predicated region body
PF: predicated region fallthrough
CT: control target
= control target key end

     0   :  { %s533_s12 = smov 0   ;;  %s535_s13 = smov 0   ;;  %s579_s0 = inlined_call_operand.vmem [shape: bf16[2,8,64], index: 0, kind: input, shape index: {}]   ;;  %s580_s1 = inlined_call_operand.vmem [shape: f32[4,64], index: 1, kind: input, shape index: {}]   ;;  %s581_s2 = inlined_call_operand.vmem [shape: f32[1,64], index: 2, kind: input, shape index: {}]   ;;  %s582_s3 = inlined_call_operand.vmem [shape: bf16[2,8,64], index: 3, kind: output, shape index: {}]  }
   0x1   :  { %s537_s14 = smov 0  }
   0x2 LB: > { %s32_s15 = sadd.s32 1, %s506_s13  ;;  %p452_p0 = scmp.ge.s32.totalorder %s510_s14, 1  ;;  %s510_s14 = sphi %s537_s14, %s13_s14   ;;  %s506_s13 = sphi %s535_s13, %s584_s13   ;;  %s502_s12 = sphi %s533_s12, %s583_s12  }
   0x3   : > { %p34_p1 = scmp.ge.s32.totalorder %s32_s15, 2  ;;  %p186_p2 = scmp.lt.s32.totalorder %s510_s14, 3 }
   0x5   : > { %s586_s15 = smov (%p34_p1, %s32_s15), 0  ;;  %p187_p3 = pnand %p452_p0, %p186_p2 }
   0x6   : > { %p227_p4 = scmp.lt.s32.totalorder (!%p187_p3), %s502_s12, 1 }
   0x7   : > { %190 = sbr.rel (%p187_p3) target bundleno = 68 (0x44), region = 32 }
   0xc   : > { %vm258_vm0 = vcmask 518144   ;;  %v270_v0 = vlaneseq  ;;  %v512_v1 = vmov 0.0   ;;  %s588_s12 = smov (!%p227_p4, %s502_s12), 1  ;;  %v262_v3 = vld [vmem:[%s580_s1] sm:$0xf]  ;;  %vm316_vm1 = vcmask 523269  }
   0xd   : > { %259 = vst.msk [vmem:[#allocation2] sm:$0x7] %vm258_vm0, %v512_v1  ;;  %s453_s18 = sshll.u32 %s588_s12, 2  ;;  %vm267_vm2 = vcmask 1042432   ;;  %v455_v14 = vld [vmem:[%s581_s2] ss:$0 sm:$0xff] }
   0xe   : > { %v271_v2 = vshrl.u32 %v270_v0, 7  ;;  %s236_s21 = scalar_lea.vmem %s579_s0, %s453_s18  ;;  %vm296_vm3 = vcmask 1046528   ;;  %vm310_vm4 = vcmask 1045504   ;;  %s253_s26 = scalar_lea.vmem %s582_s3, %s453_s18  ;;  %vm326_vm5 = vcmask 519168  }
   0xf   : > { %v260_v8 = vld [vmem:[%s236_s21] sm:$0xf] }
  0x10   : > { %v272_v4 = vsub.s32 3, %v271_v2  ;;  %v284_v5 = vsub.s32 0, %v271_v2  ;;  %v290_v6 = vsub.s32 1, %v271_v2  ;;  %v304_v7 = vsub.s32 2, %v271_v2 }
  0x11   : > { %v261_v10 = vunpack.c.l.bf16 %v260_v8 }
  0x12   : > { %v273_v9 = vrot.slane %v262_v3, %v272_v4  ;;  %v291_v11 = vrot.slane %v262_v3, %v290_v6  ;;  %v305_v12 = vrot.slane %v262_v3, %v304_v7  ;;  %v285_v15 = vrot.slane %v262_v3, %v284_v5 }
  0x13   : > { %v265_v16 = vrot.slane %v261_v10, 5 }
  0x14   : > { %v263_v13 = vld [vmem:[#allocation2] sm:$0x7]  ;;  %v274_v17 = vmul.f32 %v273_v9, %v261_v10 }
  0x15   : > { %317 = vst.msk [vmem:[#allocation2 - $0x5] sm:$0xe0] %vm316_vm1, %v261_v10  ;;  %v268_v18 = vsel %vm267_vm2, %v263_v13, %v265_v16  ;;  %v293_v20 = vmul.f32 %v291_v11, %v265_v16  ;;  %v307_v21 = vmul.f32 %v305_v12, %v265_v16 }
  0x16   : > { %v281_v19 = vadd.f32 %v455_v14, %v274_v17  ;;  %v286_v22 = vmul.f32 %v285_v15, %v268_v18  ;;  %v292_v23 = vmul.f32 %v291_v11, %v268_v18  ;;  %v306_v24 = vmul.f32 %v305_v12, %v268_v18 }
  0x17   : > { %v298_v25 = vrot.slane %v293_v20, 1  ;;  %v312_v29 = vrot.slane %v307_v21, 2 }
  0x18   : > { %v287_v26 = vadd.f32 %v286_v22, %v281_v19  ;;  %v297_v27 = vrot.slane %v292_v23, 1  ;;  %v311_v28 = vrot.slane %v306_v24, 2 }
  0x1a   : > { %v299_v30 = vsel %vm296_vm3, %v297_v27, %v298_v25  ;;  %v313_v32 = vsel %vm310_vm4, %v311_v28, %v312_v29 }
  0x1b   : > { %v301_v31 = vadd.f32 %v299_v30, %v287_v26 }
  0x1d   : > { %v315_v33 = vadd.f32 %v313_v32, %v301_v31 }
  0x1f   : > { %v456_v34 = vmul.f32 -1.442695, %v315_v33 }
  0x21   : > { %484 = vpow2.f32 %v456_v34 }
  0x2e   : > { %v485_v35 = vpop.eup %484 }
  0x2f   : > { %v321_v36 = vadd.f32 1.0, %v485_v35 }
  0x31   : > { %486 = vrcp.f32 %v321_v36 }
  0x3e   : > { %v487_v37 = vpop.eup %486 }
  0x3f   : > { %v324_v38 = vmul.f32 %v487_v37, %v315_v33 }
  0x41   : > { %v325_v39 = vpack.c.bf16 %v324_v38, %v324_v38 }
  0x43   : > { %327 = vst.msk [vmem:[%s253_s26] sm:$0xf] %vm326_vm5, %v325_v39 }
  0x44 PF: > { %s13_s14 = sadd.s32 1, %s510_s14   ;;  %s583_s12 = smov %s506_s13 }
  0x45   : > { %p10_p5 = scmp.ge.s32.totalorder %s13_s14, 4   ;;  %s584_s13 = smov %s586_s15 }
  0x47   :  { %12 = sbr.rel (!%p10_p5) target bundleno = 2 (0x2), region = 72 }

// kernel: _lambda_.9
= control target key start
LH: loop header
LB: loop body
LE: loop exit
PB: predicated region body
PF: predicated region fallthrough
CT: control target
= control target key end

     0   :  { %vm16_vm0 = vcmask 277504   ;;  %v151_v0 = vmov 0.0   ;;  %vm152_vm1 = vmmov 0   ;;  %vm60_vm2 = vcmask 523264   ;;  %s195_s1 = inlined_call_operand.vmem [shape: bf16[64,34], index: 1, kind: input, shape index: {}]   ;;  %s196_s0 = inlined_call_operand.vmem [shape: bf16[16,64], index: 0, kind: input, shape index: {}]   ;;  %s197_s2 = inlined_call_operand.vmem [shape: f32[16,34], index: 2, kind: output, shape index: {}]  }
   0x1   :  { %132 = vmatprep.subr.bf16.mxu0 %v151_v0  ;;  %v146_v1 = vld [vmem:[%s195_s1 + $0x18] sm:$0xff]   ;;  %140 = vmatprep.mubr.msk.bf16.mxu0 %vm152_vm1, %v151_v0  ;;  %17 = vst.msk [vmem:[#allocation2] sm:$0xff] %vm16_vm0, %v151_v0  ;;  %18 = vst.msk [vmem:[#allocation2 + $0x8] sm:$0xff] %vm16_vm0, %v151_v0  ;;  %v147_v2 = vld [vmem:[%s195_s1 + $0x10] sm:$0xff]  }
   0x2   :  { %133 = vmatpush3.bf16.msra.mxu0 %v146_v1  ;;  %v148_v3 = vld [vmem:[%s195_s1 + $0x8] sm:$0xff]   ;;  %v149_v4 = vld [vmem:[%s195_s1] sm:$0xff]  }
   0x3   :  { %134 = vmatprep.subr.bf16.mxu0 %v151_v0  ;;  %v150_v5 = vld [vmem:[%s196_s0] sm:$0xff]  }
   0x6   :  { %135 = vmatpush3.bf16.msra.mxu0 %v147_v2 }
   0x7   :  { %136 = vmatprep.subr.bf16.mxu0 %v151_v0 }
   0x8   :  { %v19_v6 = vld [vmem:[#allocation2] sm:$0xff]  ;;  %v20_v10 = vld [vmem:[#allocation2 + $0x8] sm:$0xff] }
   0xa   :  { %137 = vmatpush3.bf16.msra.mxu0 %v148_v3 }
   0xb   :  { %138 = vmatprep.subr.bf16.mxu0 %v151_v0 }
   0xe   :  { %139 = vmatpush3.bf16.msra.mxu0 %v149_v4 }
  0x11   :  { %141 = vmatmul.mubr.msk.bf16.vlgmr.msra.gmra.mxu0 %vm60_vm2, %v150_v5 }
  0xd1   :  { %v98_v7 = vpop.f32.mrf.mxu0 }
  0xd2   :  { %v105_v8 = vadd.f32 %v98_v7, %v19_v6 }
  0xd3   :  { %v142_v9 = vpop.f32.mrf.mxu0 }
  0xd4   :  { %108 = vst.msk [vmem:[#allocation2] sm:$0xff] %vm16_vm0, %v105_v8 }
  0xd5   :  { %v101_v11 = vpop.f32.mrf.mxu0 }
  0xd6   :  { %v106_v12 = vadd.f32 %v101_v11, %v20_v10 }
  0xd7   :  { %v143_v13 = vpop.f32.mrf.mxu0 }
  0xd8   :  { %109 = vst.msk [vmem:[#allocation2 + $0x8] sm:$0xff] %vm16_vm0, %v106_v12 }
  0xdb   :  { %v113_v14 = vld [vmem:[#allocation2] sm:$0xff] }
  0xdc   :  { %115 = vst.msk [vmem:[%s197_s2] sm:$0xff] %vm16_vm0, %v113_v14 }
  0xdf   :  { %v114_v15 = vld [vmem:[#allocation2 + $0x8] sm:$0xff] }
  0xe0   :  { %116 = vst.msk [vmem:[%s197_s2 + $0x8] sm:$0xff] %vm16_vm0, %v114_v15 }

// kernel: _lambda_.11
= control target key start
LH: loop header
LB: loop body
LE: loop exit
PB: predicated region body
PF: predicated region fallthrough
CT: control target
= control target key end

     0   :  { %v189_v1 = vmov 0.0   ;;  %vm190_vm0 = vmmov 0   ;;  %vm17_vm1 = vcmask 261120   ;;  %s233_s0 = inlined_call_operand.vmem [shape: bf16[16,64], index: 0, kind: input, shape index: {}]   ;;  %s234_s1 = inlined_call_operand.vmem [shape: bf16[64,32], index: 1, kind: input, shape index: {}]   ;;  %s235_s2 = inlined_call_operand.hbm [shape: f32[16,32], index: 2, kind: output, shape index: {}]  }
   0x1   :  { %v162_v0 = vld [vmem:[%s234_s1 + $0x18] sm:$0xff]   ;;  %145 = vmatprep.subr.bf16.mxu0 %v189_v1  ;;  %v163_v2 = vld [vmem:[%s234_s1 + $0x10] sm:$0xff]   ;;  %153 = vmatprep.mubr.msk.bf16.mxu0 %vm190_vm0, %v189_v1  ;;  %18 = vst.msk [vmem:[#allocation2] sm:$0xff] %vm17_vm1, %v189_v1  ;;  %19 = vst.msk [vmem:[#allocation2 + $0x8] sm:$0xff] %vm17_vm1, %v189_v1 }
   0x2   :  { %146 = vmatpush3.bf16.msra.mxu0 %v162_v0 }
   0x3   :  { %147 = vmatprep.subr.bf16.mxu0 %v189_v1 }
   0x4   :  { %7 = vsyncpa [#allocation4], 0  ;;  %v164_v3 = vld [vmem:[%s234_s1 + $0x8] sm:$0xff]   ;;  %v165_v4 = vld [vmem:[%s234_s1] sm:$0xff]   ;;  %vm61_vm2 = vcmask 523264   ;;  %s191_s1 = smov [#allocation3]  }
   0x5   :  { %v166_v5 = vld [vmem:[%s233_s0] sm:$0xff]   ;;  %s123_s19 = sshll.u32 %s191_s1, 4  ;;  %s124_s19 = int_to_ptr.vmem [resolvable:$true] %s123_s19 }
   0x6   :  { %148 = vmatpush3.bf16.msra.mxu0 %v163_v2  ;;  %s167_s0 = scalar_lea.vmem %s124_s19, 256  ;;  %p172_p1 = scmp.lt.s32.totalorder %s124_s19, %s124_s19 }
   0x7   :  { %149 = vmatprep.subr.bf16.mxu0 %v189_v1  ;;  %p168_p0 = scmp.ne.s32.totalorder %s124_s19, %s167_s0  ;;  %p173_p2 = scmp.lt.s32.totalorder %s167_s0, %s167_s0 }
   0x8   :  { %v20_v6 = vld [vmem:[#allocation2] sm:$0xff]  ;;  %v21_v10 = vld [vmem:[#allocation2 + $0x8] sm:$0xff] }
   0x9   :  { %p174_p3 = por %p173_p2, %p172_p1 }
   0xa   :  { %150 = vmatpush3.bf16.msra.mxu0 %v164_v3 }
   0xb   :  { %151 = vmatprep.subr.bf16.mxu0 %v189_v1  ;;  %p175_p4 = pnand %p174_p3, %p168_p0 }
   0xe   :  { %152 = vmatpush3.bf16.msra.mxu0 %v165_v4 }
  0x11   :  { %154 = vmatmul.mubr.msk.bf16.vlgmr.msra.gmra.mxu0 %vm61_vm2, %v166_v5 }
  0xd1   :  { %v99_v7 = vpop.f32.mrf.mxu0 }
  0xd2   :  { %v106_v8 = vadd.f32 %v99_v7, %v20_v6 }
  0xd3   :  { %v155_v9 = vpop.f32.mrf.mxu0 }
  0xd4   :  { %109 = vst.msk [vmem:[#allocation2] sm:$0xff] %vm17_vm1, %v106_v8 }
  0xd5   :  { %v102_v11 = vpop.f32.mrf.mxu0 }
  0xd6   :  { %v107_v12 = vadd.f32 %v102_v11, %v21_v10 }
  0xd7   :  { %v156_v13 = vpop.f32.mrf.mxu0 }
  0xd8   :  { %110 = vst.msk [vmem:[#allocation2 + $0x8] sm:$0xff] %vm17_vm1, %v107_v12 }
  0xdb   :  { %v114_v14 = vld [vmem:[#allocation2] sm:$0xff] }
  0xdc   :  { %116 = vst.msk [vmem:[#allocation3] sm:$0xff] %vm17_vm1, %v114_v14 }
  0xdf   :  { %v115_v15 = vld [vmem:[#allocation2 + $0x8] sm:$0xff] }
  0xe0   :  { %117 = vst.msk [vmem:[#allocation3 + $0x8] sm:$0xff] %vm17_vm1, %v115_v15 }
  0xe1   :  { %178 = shalt.err (!%p175_p4)
}
  0xe2   :  { %s192_s20 = smov 128   ;;  %s193_s21 = smov 8  }
  0xe3   :  { %129 = dma.vmem_to_hbm [thread:$0]  %s124_s19, 256, %s235_s2, [#allocation4], %s192_s20, %s192_s20, %s193_s21  }
  0xe4   :  { %187 = dma.done.wait [#allocation4], 256  }
  0xe5   :  { %188 = vsyncadd [#allocation4], 4294967040 }
  0xe6   :  { %133 = vsyncpa [#allocation4], 1 }

// kernel: _lambda_.10
= control target key start
LH: loop header
LB: loop body
LE: loop exit
PB: predicated region body
PF: predicated region fallthrough
CT: control target
= control target key end

     0   :  { %s1942_s27 = smov 0   ;;  %s1944_s28 = smov 0   ;;  %s2288_s0 = inlined_call_operand.vmem [shape: bf16[2,8,64], index: 0, kind: input, shape index: {}]   ;;  %s2289_s1 = inlined_call_operand.vmem [shape: f32[2,8,2], index: 1, kind: input, shape index: {}]   ;;  %s2290_s2 = inlined_call_operand.vmem [shape: f32[2,8,32], index: 2, kind: input, shape index: {}]   ;;  %s2291_s3 = inlined_call_operand.vmem [shape: bf16[2,8,64], index: 3, kind: input, shape index: {}]   ;;  %s2292_s4 = inlined_call_operand.vmem [shape: f32[16,64], index: 4, kind: input, shape index: {}]   ;;  %s2293_s5 = inlined_call_operand.vmem [shape: f32[2,64], index: 5, kind: input, shape index: {}]   ;;  %s2294_s6 = inlined_call_operand.vmem [shape: f32[1,64], index: 6, kind: input, shape index: {}]   ;;  %s2295_s7 = inlined_call_operand.vmem [shape: f32[1,64], index: 7, kind: input, shape index: {}]   ;;  %s2296_s8 = inlined_call_operand.vmem [shape: bf16[2,8,64], index: 8, kind: output, shape index: {}]  }
   0x1   :  { %s1946_s29 = smov 0  }
   0x2 LB: > { %s37_s30 = sadd.s32 1, %s1875_s28  ;;  %p1617_p0 = scmp.ge.s32.totalorder %s1879_s29, 1  ;;  %s1879_s29 = sphi %s1946_s29, %s18_s29   ;;  %s1875_s28 = sphi %s1944_s28, %s2300_s28   ;;  %s1871_s27 = sphi %s1942_s27, %s2299_s27  }
   0x3   : > { %p39_p1 = scmp.ge.s32.totalorder %s37_s30, 2  ;;  %p375_p2 = scmp.lt.s32.totalorder %s1879_s29, 3 }
   0x5   : > { %s2302_s30 = smov (%p39_p1, %s37_s30), 0  ;;  %p376_p3 = pnand %p1617_p0, %p375_p2 }
   0x6   : > { %p457_p4 = scmp.lt.s32.totalorder (!%p376_p3), %s1871_s27, 1 }
   0x7   : > { %379 = sbr.rel (%p376_p3) target bundleno = 409 (0x199), region = 52 }
   0xc   : > { %v535_v0 = vlaneseq  ;;  %v1893_v1 = vmov 0   ;;  %s2304_s27 = smov (!%p457_p4, %s1871_s27), 1  ;;  %v1894_v10 = vmov 1   ;;  %vm519_vm0 = vcmask 523264   ;;  %v529_v27 = vld [vmem:[%s2293_s5] sm:$0x3] }
   0xd   : > { %1803 = vset.pattern.permute.xlu0 %v1893_v1  ;;  %s1619_s9 = sshll.u32 %s2304_s27, 3  ;;  %s1962_s10 = sshll.u32 %s2304_s27, 2  ;;  %v1895_v24 = vmov 0.0   ;;  %v1623_v34 = vld [vmem:[%s2295_s7] ss:$0 sm:$0xff] }
   0xe   : > { %v1960_v2 = vshrl.u32 %v535_v0, 7  ;;  %s473_s13 = scalar_lea.vmem %s2289_s1, %s1619_s9  ;;  %s480_s16 = scalar_lea.vmem %s2290_s2, %s1619_s9  ;;  %520 = vst.msk [vmem:[#allocation2] sm:$0xff] %vm519_vm0, %v1895_v24  ;;  %521 = vst.msk [vmem:[#allocation2 + $0x8] sm:$0xff] %vm519_vm0, %v1895_v24  ;;  %v1896_v42 = vmov 1966171168  }
   0xf   : > { %v528_v4 = vld [vmem:[%s473_s13] sm:$0xff]  ;;  %s490_s19 = scalar_lea.vmem %s2291_s3, %s1962_s10  ;;  %s514_s22 = scalar_lea.vmem %s2296_s8, %s1962_s10  ;;  %v575_v43 = vunpack.c.l.s4 %v1896_v42 }
  0x10   : > { %v1965_v3 = vsub.s32 0, %v1960_v2  ;;  %v571_v5 = vld [vmem:[%s480_s16] sm:$0xff]  ;;  %532 = vperm.xlu0 %1803, %v528_v4   ;;  %v546_v9 = vsub.s32 1, %v1960_v2  ;;  %v751_v12 = vsub.s32 2, %v1960_v2  ;;  %v762_v14 = vsub.s32 3, %v1960_v2  ;;  %s466_s11 = scalar_lea.vmem %s2288_s0, %s1962_s10  ;;  %s2166_s16 = smov 0  }
  0x11   : > { %v1981_v6 = vld [vmem:[%s490_s19] sm:$0xf]  ;;  %v773_v16 = vsub.s32 4, %v1960_v2  ;;  %v784_v18 = vsub.s32 5, %v1960_v2  ;;  %v795_v20 = vsub.s32 6, %v1960_v2  ;;  %v806_v22 = vsub.s32 7, %v1960_v2 }
  0x12   : > { %v1984_v7 = vrot.slane %v571_v5, %v1965_v3  ;;  %v525_v8 = vunpack.c.l.bf16 %v1981_v6  ;;  %v1989_v11 = vrot.slane %v571_v5, %v546_v9  ;;  %v1994_v13 = vrot.slane %v571_v5, %v751_v12  ;;  %v2049_v49 = vld [vmem:[%s466_s11] sm:$0xf] }
  0x13   : > { %v1999_v15 = vrot.slane %v571_v5, %v762_v14  ;;  %v2004_v17 = vrot.slane %v571_v5, %v773_v16  ;;  %v2009_v19 = vrot.slane %v571_v5, %v784_v18  ;;  %v2014_v21 = vrot.slane %v571_v5, %v795_v20 }
  0x14   : > { %732 = vbcast.lane.b32.xlu1 %v1984_v7, 256  ;;  %1804 = vset.pattern.permute.xlu0 %v1894_v10  ;;  %v2019_v23 = vrot.slane %v571_v5, %v806_v22  ;;  %v538_v29 = vrot.slane %v529_v27, %v1965_v3  ;;  %v547_v30 = vrot.slane %v529_v27, %v546_v9  ;;  %v576_v47 = vunpack.c.0.s8 %v575_v43  ;;  %v526_v10 = vld [vmem:[%s2292_s4] sm:$0xff]  ;;  %v527_v27 = vld [vmem:[%s2292_s4 + $0x8] sm:$0xff] }
  0x15   : > { %541 = vperm.xlu0 %1804, %v528_v4   ;;  %v2026_v25 = vld [vmem:[#allocation2] sm:$0xff]   ;;  %v2028_v26 = vld [vmem:[#allocation2 + $0x8] sm:$0xff]   ;;  %v523_v52 = vunpack.c.l.bf16 %v2049_v49 }
  0x16   : > { %v2053_v53 = vsub.s32 %v576_v47, %v1960_v2 }
  0x18   : > { %736 = vbcast.lane.b32.xlu1 %v1984_v7, 264 }
  0x19   : > { %747 = vbcast.lane.b32.xlu0 %v1989_v11, 264 }
  0x1c   : > { %743 = vbcast.lane.b32.xlu1 %v1989_v11, 256 }
  0x1d   : > { %758 = vbcast.lane.b32.xlu0 %v1994_v13, 264 }
  0x20   : > { %754 = vbcast.lane.b32.xlu1 %v1994_v13, 256 }
  0x21   : > { %769 = vbcast.lane.b32.xlu0 %v1999_v15, 264 }
  0x24   : > { %765 = vbcast.lane.b32.xlu1 %v1999_v15, 256 }
  0x25   : > { %780 = vbcast.lane.b32.xlu0 %v2004_v17, 264 }
  0x28   : > { %776 = vbcast.lane.b32.xlu1 %v2004_v17, 256 }
  0x29   : > { %791 = vbcast.lane.b32.xlu0 %v2009_v19, 264 }
  0x2c   : > { %787 = vbcast.lane.b32.xlu1 %v2009_v19, 256 }
  0x2d   : > { %802 = vbcast.lane.b32.xlu0 %v2014_v21, 264 }
  0x30   : > { %798 = vbcast.lane.b32.xlu1 %v2014_v21, 256 }
  0x31   : > { %813 = vbcast.lane.b32.xlu0 %v2019_v23, 264 }
  0x34   : > { %809 = vbcast.lane.b32.xlu1 %v2019_v23, 256 }
  0x86   : > { %v2037_v39 = vpop.permute.xlu1 %732 }
  0x8a   : > { %v2039_v41 = vpop.permute.xlu1 %736 }
  0x8b   : > { %v533_v28 = vpop.permute.xlu0 %532 }
  0x8c   : > { %v539_v32 = vmul.f32 %v538_v29, %v533_v28 }
  0x8e   : > { %v2045_v45 = vpop.permute.xlu1 %743 }
  0x90   : > { %v542_v31 = vpop.permute.xlu0 %541 }
  0x91   : > { %v548_v33 = vmul.f32 %v547_v30, %v542_v31 }
  0x92   : > { %v2055_v56 = vpop.permute.xlu1 %754 }
  0x93   : > { %v549_v35 = vadd.f32 %v548_v33, %v539_v32 }
  0x94   : > { %v2047_v46 = vpop.permute.xlu0 %747 }
  0x95   : > { %v557_v36 = vadd.f32 %v1623_v34, %v549_v35 }
  0x96   : > { %v2067_v4 = vpop.permute.xlu1 %765 }
  0x97   : > { %v559_v37 = vmul.f32 1.442695, %v557_v36  ;;  %vm558_vm2 = vcmp.gt.f32.partialorder %v557_v36, 20.0 }
  0x98   : > { %v2057_v57 = vpop.permute.xlu0 %758 }
  0x99   : > { %1805 = vpow2.f32 %v559_v37 }
  0x9c   : > { %v2069_v5 = vpop.permute.xlu0 %769 }
  0xa6   : > { %v1806_v38 = vpop.eup %1805 }
  0xa7   : > { %v561_v40 = vadd.f32 1.0, %v1806_v38  ;;  %v564_v44 = vmul.f32 -0.5, %v1806_v38  ;;  %v567_v50 = vand.u32 2147483647, %v1806_v38 }
  0xa9   : > { %1807 = vlog2.f32 %v561_v40  ;;  %v565_v48 = vadd.f32 1.0, %v564_v44  ;;  %vm568_vm1 = vcmp.lt.f32.partialorder %v567_v50, 0.0004427343  ;;  %v2098_v50 = vpop.permute.xlu0 %780 }
  0xab   : > { %v566_v55 = vmul.f32 %v1806_v38, %v565_v48  ;;  %v2096_v48 = vpop.permute.xlu1 %776 }
  0xb6   : > { %v1808_v51 = vpop.eup %1807 }
  0xb7   : > { %v563_v54 = vmul.f32 0.6931472, %v1808_v51 }
  0xb9   : > { %v569_v58 = vsel %vm568_vm1, %v566_v55, %v563_v54 }
  0xba   : > { %v570_v59 = vsel %vm558_vm2, %v557_v36, %v569_v58 }
  0xbb   : > { %v573_v60 = vcombine.high %v570_v59, %v570_v59  ;;  %v580_v61 = vrot.slane %v570_v59, %v2053_v53  ;;  %v815_v62 = vmul.f32 %v570_v59, %v523_v52 }
  0xbd   : > { %v587_v63 = vrot.slane %v573_v60, %v2053_v53  ;;  %v588_v0 = vcombine.high %v580_v61, %v580_v61  ;;  %v596_v1 = vrot.slane %v580_v61, %v2053_v53  ;;  %v2065_v2 = vrot.slane %v815_v62, %v2053_v53 }
  0xbe   : > { %v817_v9 = vcombine.high %v815_v62, %v815_v62 }
  0xbf   : > { %v589_v12 = vcombine.high %v587_v63, %v587_v63  ;;  %v603_v14 = vrot.slane %v587_v63, %v2053_v53  ;;  %v610_v16 = vrot.slane %v588_v0, %v2053_v53  ;;  %v618_v18 = vcombine.high %v596_v1, %v596_v1 }
  0xc0   : > { %v625_v20 = vrot.slane %v596_v1, %v1965_v3  ;;  %v2079_v22 = vrot.slane %v2065_v2, %v2053_v53  ;;  %v2082_v24 = vrot.slane %v817_v9, %v2053_v53  ;;  %v832_v35 = vcombine.high %v2065_v2, %v2065_v2 }
  0xc1   : > { %v617_v28 = vrot.slane %v589_v12, %v2053_v53  ;;  %v619_v29 = vcombine.high %v603_v14, %v603_v14  ;;  %v620_v30 = vcombine.high %v610_v16, %v610_v16  ;;  %v629_v31 = vrot.slane %v610_v16, %v1965_v3 }
  0xc2   : > { %v633_v32 = vrot.slane %v618_v18, %v1965_v3  ;;  %v641_v33 = vrot.slane %v603_v14, %v1965_v3  ;;  %v662_v34 = vmul.f32 %v625_v20, %v526_v10  ;;  %v663_v42 = vmul.f32 %v625_v20, %v527_v27 }
  0xc3   : > { %v621_v36 = vcombine.high %v617_v28, %v617_v28  ;;  %v637_v37 = vrot.slane %v620_v30, %v1965_v3  ;;  %v645_v38 = vrot.slane %v617_v28, %v1965_v3  ;;  %v649_v40 = vrot.slane %v619_v29, %v1965_v3 }
  0xc4   : > { %v664_v43 = vmul.f32 %v629_v31, %v526_v10  ;;  %v665_v44 = vmul.f32 %v629_v31, %v527_v27  ;;  %v666_v47 = vmul.f32 %v633_v32, %v526_v10  ;;  %v667_v54 = vmul.f32 %v633_v32, %v527_v27  ;;  %v788_v32 = vpop.permute.xlu1 %787 }
  0xc5   : > { %v653_v51 = vrot.slane %v621_v36, %v1965_v3  ;;  %v668_v55 = vmul.f32 %v637_v37, %v526_v10  ;;  %v669_v58 = vmul.f32 %v637_v37, %v527_v27  ;;  %v670_v59 = vmul.f32 %v641_v33, %v526_v10 }
  0xc6   : > { %v671_v60 = vmul.f32 %v641_v33, %v527_v27  ;;  %v672_v61 = vmul.f32 %v645_v38, %v526_v10  ;;  %v673_v62 = vmul.f32 %v645_v38, %v527_v27  ;;  %v674_v63 = vmul.f32 %v649_v40, %v526_v10  ;;  %v792_v33 = vpop.permute.xlu0 %791 }
  0xc7   : > { %v675_v0 = vmul.f32 %v649_v40, %v527_v27  ;;  %v676_v1 = vmul.f32 %v653_v51, %v526_v10  ;;  %v678_v2 = vmul.f32 1.442695, %v662_v34  ;;  %v677_v9 = vmul.f32 %v653_v51, %v527_v27 }
  0xc8   : > { %v680_v12 = vmul.f32 1.442695, %v663_v42  ;;  %v682_v14 = vmul.f32 1.442695, %v664_v43  ;;  %v684_v16 = vmul.f32 1.442695, %v665_v44  ;;  %v869_v28 = vrot.slane %v2079_v22, %v1965_v3 }
  0xc9   : > { %1809 = vpow2.f32 %v678_v2  ;;  %v686_v18 = vmul.f32 1.442695, %v666_v47  ;;  %v688_v20 = vmul.f32 1.442695, %v667_v54  ;;  %v690_v29 = vmul.f32 1.442695, %v668_v55 }
  0xca   : > { %1811 = vpow2.f32 %v680_v12  ;;  %v692_v30 = vmul.f32 1.442695, %v669_v58  ;;  %v694_v31 = vmul.f32 1.442695, %v670_v59  ;;  %v696_v36 = vmul.f32 1.442695, %v671_v60  ;;  %v799_v58 = vpop.permute.xlu1 %798  ;;  %v803_v59 = vpop.permute.xlu0 %802 }
  0xcb   : > { %1813 = vpow2.f32 %v682_v14  ;;  %v698_v10 = vmul.f32 1.442695, %v672_v61  ;;  %v700_v34 = vmul.f32 1.442695, %v673_v62  ;;  %v702_v27 = vmul.f32 1.442695, %v674_v63 }
  0xcc   : > { %1815 = vpow2.f32 %v684_v16  ;;  %v704_v37 = vmul.f32 1.442695, %v675_v0  ;;  %v706_v38 = vmul.f32 1.442695, %v676_v1  ;;  %v906_v40 = vmul.f32 %v869_v28, %v2037_v39 }
  0xcd   : > { %1817 = vpow2.f32 %v686_v18  ;;  %v907_v42 = vmul.f32 %v869_v28, %v2039_v41  ;;  %v854_v43 = vrot.slane %v832_v35, %v2053_v53  ;;  %v862_v44 = vcombine.high %v2079_v22, %v2079_v22 }
  0xce   : > { %1819 = vpow2.f32 %v688_v20  ;;  %v847_v47 = vrot.slane %v2082_v24, %v2053_v53  ;;  %v833_v51 = vcombine.high %v2082_v24, %v2082_v24  ;;  %v708_v54 = vmul.f32 1.442695, %v677_v9  ;;  %922 = vst.msk [vmem:[#allocation4] sm:$0xff] %vm519_vm0, %v906_v40  ;;  %v810_v2 = vpop.permute.xlu1 %809  ;;  %v814_v9 = vpop.permute.xlu0 %813 }
  0xcf   : > { %1821 = vpow2.f32 %v690_v29  ;;  %923 = vst.msk [vmem:[#allocation4 + $0x8] sm:$0xff] %vm519_vm0, %v907_v42  ;;  %v873_v39 = vrot.slane %v854_v43, %v1965_v3  ;;  %v864_v41 = vcombine.high %v854_v43, %v854_v43  ;;  %v877_v35 = vrot.slane %v862_v44, %v1965_v3 }
  0xd0   : > { %1823 = vpow2.f32 %v692_v30  ;;  %v885_v22 = vrot.slane %v847_v47, %v1965_v3  ;;  %v861_v55 = vrot.slane %v833_v51, %v2053_v53 }
  0xd1   : > { %1825 = vpow2.f32 %v694_v31  ;;  %v908_v24 = vmul.f32 %v873_v39, %v2045_v45  ;;  %v909_v60 = vmul.f32 %v873_v39, %v2047_v46  ;;  %v881_v61 = vrot.slane %v864_v41, %v1965_v3 }
  0xd2   : > { %1827 = vpow2.f32 %v696_v36  ;;  %v910_v62 = vmul.f32 %v877_v35, %v2055_v56  ;;  %v911_v63 = vmul.f32 %v877_v35, %v2057_v57  ;;  %v914_v0 = vmul.f32 %v885_v22, %v2096_v48 }
  0xd3   : > { %1829 = vpow2.f32 %v698_v10  ;;  %924 = vst.msk [vmem:[#allocation4 + $0x10] sm:$0xff] %vm519_vm0, %v908_v24  ;;  %925 = vst.msk [vmem:[#allocation4 + $0x18] sm:$0xff] %vm519_vm0, %v909_v60  ;;  %v912_v53 = vmul.f32 %v881_v61, %v2067_v4  ;;  %v913_v45 = vmul.f32 %v881_v61, %v2069_v5  ;;  %v915_v46 = vmul.f32 %v885_v22, %v2098_v50 }
  0xd4   : > { %1831 = vpow2.f32 %v700_v34  ;;  %926 = vst.msk [vmem:[#allocation4 + $0x20] sm:$0xff] %vm519_vm0, %v910_v62  ;;  %927 = vst.msk [vmem:[#allocation4 + $0x28] sm:$0xff] %vm519_vm0, %v911_v63  ;;  %v889_v56 = vrot.slane %v861_v55, %v1965_v3  ;;  %v863_v57 = vcombine.high %v847_v47, %v847_v47  ;;  %v865_v48 = vcombine.high %v861_v55, %v861_v55 }
  0xd5   : > { %930 = vst.msk [vmem:[#allocation4 + $0x40] sm:$0xff] %vm519_vm0, %v914_v0  ;;  %1833 = vpow2.f32 %v702_v27  ;;  %928 = vst.msk [vmem:[#allocation4 + $0x30] sm:$0xff] %vm519_vm0, %v912_v53 }
  0xd6   : > { %929 = vst.msk [vmem:[#allocation4 + $0x38] sm:$0xff] %vm519_vm0, %v913_v45  ;;  %931 = vst.msk [vmem:[#allocation4 + $0x48] sm:$0xff] %vm519_vm0, %v915_v46  ;;  %v1810_v4 = vpop.eup %1809  ;;  %1835 = vpow2.f32 %v704_v37  ;;  %v916_v5 = vmul.f32 %v889_v56, %v788_v32  ;;  %v917_v50 = vmul.f32 %v889_v56, %v792_v33  ;;  %v893_v1 = vrot.slane %v863_v57, %v1965_v3 }
  0xd7   : > { %v1812_v12 = vpop.eup %1811  ;;  %1837 = vpow2.f32 %v706_v38  ;;  %711 = vst.msk [vmem:[#allocation3] sm:$0xff] %vm519_vm0, %v1810_v4  ;;  %v897_v14 = vrot.slane %v865_v48, %v1965_v3 }
  0xd8   : > { %v1814_v16 = vpop.eup %1813  ;;  %1839 = vpow2.f32 %v708_v54  ;;  %712 = vst.msk [vmem:[#allocation3 + $0x8] sm:$0xff] %vm519_vm0, %v1812_v12  ;;  %932 = vst.msk [vmem:[#allocation4 + $0x50] sm:$0xff] %vm519_vm0, %v916_v5  ;;  %v918_v18 = vmul.f32 %v893_v1, %v799_v58  ;;  %v919_v20 = vmul.f32 %v893_v1, %v803_v59 }
  0xd9   : > { %933 = vst.msk [vmem:[#allocation4 + $0x58] sm:$0xff] %vm519_vm0, %v917_v50  ;;  %v1816_v28 = vpop.eup %1815  ;;  %713 = vst.msk [vmem:[#allocation3 + $0x10] sm:$0xff] %vm519_vm0, %v1814_v16  ;;  %v920_v29 = vmul.f32 %v897_v14, %v810_v2  ;;  %v921_v30 = vmul.f32 %v897_v14, %v814_v9 }
  0xda   : > { %v1818_v31 = vpop.eup %1817  ;;  %714 = vst.msk [vmem:[#allocation3 + $0x18] sm:$0xff] %vm519_vm0, %v1816_v28  ;;  %934 = vst.msk [vmem:[#allocation4 + $0x60] sm:$0xff] %vm519_vm0, %v918_v18 }
  0xdb   : > { %935 = vst.msk [vmem:[#allocation4 + $0x68] sm:$0xff] %vm519_vm0, %v919_v20  ;;  %v1820_v3 = vpop.eup %1819  ;;  %715 = vst.msk [vmem:[#allocation3 + $0x20] sm:$0xff] %vm519_vm0, %v1818_v31 }
  0xdc   : > { %936 = vst.msk [vmem:[#allocation4 + $0x70] sm:$0xff] %vm519_vm0, %v920_v29  ;;  %937 = vst.msk [vmem:[#allocation4 + $0x78] sm:$0xff] %vm519_vm0, %v921_v30  ;;  %v1822_v32 = vpop.eup %1821 }
  0xdd   : > { %716 = vst.msk [vmem:[#allocation3 + $0x28] sm:$0xff] %vm519_vm0, %v1820_v3  ;;  %v1824_v33 = vpop.eup %1823  ;;  %717 = vst.msk [vmem:[#allocation3 + $0x30] sm:$0xff] %vm519_vm0, %v1822_v32 }
  0xde   : > { %v1826_v36 = vpop.eup %1825  ;;  %718 = vst.msk [vmem:[#allocation3 + $0x38] sm:$0xff] %vm519_vm0, %v1824_v33 }
  0xdf   : > { %v1828_v10 = vpop.eup %1827  ;;  %719 = vst.msk [vmem:[#allocation3 + $0x40] sm:$0xff] %vm519_vm0, %v1826_v36 }
  0xe0   : > { %v1830_v34 = vpop.eup %1829  ;;  %720 = vst.msk [vmem:[#allocation3 + $0x48] sm:$0xff] %vm519_vm0, %v1828_v10 }
  0xe1   : > { %v1832_v27 = vpop.eup %1831  ;;  %721 = vst.msk [vmem:[#allocation3 + $0x50] sm:$0xff] %vm519_vm0, %v1830_v34 }
  0xe2   : > { %v1834_v37 = vpop.eup %1833  ;;  %722 = vst.msk [vmem:[#allocation3 + $0x58] sm:$0xff] %vm519_vm0, %v1832_v27 }
  0xe3   : > { %v1836_v38 = vpop.eup %1835  ;;  %723 = vst.msk [vmem:[#allocation3 + $0x60] sm:$0xff] %vm519_vm0, %v1834_v37 }
  0xe4   : > { %v1838_v40 = vpop.eup %1837  ;;  %724 = vst.msk [vmem:[#allocation3 + $0x68] sm:$0xff] %vm519_vm0, %v1836_v38 }
  0xe5   : > { %v1840_v42 = vpop.eup %1839  ;;  %725 = vst.msk [vmem:[#allocation3 + $0x70] sm:$0xff] %vm519_vm0, %v1838_v40 }
  0xe6   : > { %726 = vst.msk [vmem:[#allocation3 + $0x78] sm:$0xff] %vm519_vm0, %v1840_v42 }
  0xe7 LB: >> { %s1684_s17 = sshll.u32 %s1891_s16, 6  ;;  %s1688_s20 = sshll.u32 %s1891_s16, 5  ;;  %vm971_vm3 = vcmask 519168   ;;  %s1891_s16 = sphi %s2166_s16, %s945_s16   ;;  %v1887_v25 = vphi %v2026_v25, %v2298_v25   ;;  %v1883_v26 = vphi %v2028_v26, %v2297_v26  }
  0xe8   : >> { %s2174_s18 = scalar_lea.vmem [#allocation3], %s1684_s17  ;;  %s2177_s19 = scalar_lea.vmem [#allocation4], %s1684_s17 }
  0xe9   : >> { %v956_v44 = vld [vmem:[%s2177_s19] sm:$0xff]  ;;  %v957_v39 = vld [vmem:[%s2177_s19 + $0x8] sm:$0xff]  ;;  %v1636_v58 = vld [vmem:[%s2177_s19 + $0x10] sm:$0xff]  ;;  %s970_s21 = scalar_lea.vmem [#allocation5], %s1688_s20  ;;  %s945_s16 = sadd.s32 1, %s1891_s16  }
  0xea   : >> { %v1637_v59 = vld [vmem:[%s2177_s19 + $0x18] sm:$0xff]  ;;  %v1650_v53 = vld [vmem:[%s2177_s19 + $0x20] sm:$0xff]  ;;  %v1651_v45 = vld [vmem:[%s2177_s19 + $0x28] sm:$0xff]  ;;  %p942_p5 = scmp.ge.s32.totalorder %s945_s16, 2  }
  0xeb   : >> { %v1664_v2 = vld [vmem:[%s2177_s19 + $0x30] sm:$0xff]  ;;  %v1665_v9 = vld [vmem:[%s2177_s19 + $0x38] sm:$0xff]  ;;  %1069 = vbcast.lane.b32.xlu1 (%p942_p5), %v1994_v13, 272  ;;  %1061 = vbcast.lane.b32.xlu0 (%p942_p5), %v1989_v11, 272  ;;  %vm1339_vm4 = vcmask (%p942_p5), 1041409   ;;  %vm1342_vm5 = vcmask (%p942_p5), 1042434  }
  0xec   : > { %vm1345_vm6 = vcmask (%p942_p5), 1043459   ;;  %vm1348_vm7 = vcmask (%p942_p5), 1044484   ;;  %vm1351_vm8 = vcmask (%p942_p5), 1045509   ;;  %vm1354_vm9 = vcmask (%p942_p5), 1046534  }
  0xed   : >> { %v951_v43 = vld [vmem:[%s2174_s18] sm:$0xff]  ;;  %v952_v47 = vld [vmem:[%s2174_s18 + $0x8] sm:$0xff]  ;;  %v1632_v41 = vld [vmem:[%s2174_s18 + $0x10] sm:$0xff]  ;;  %vm1357_vm10 = vcmask (%p942_p5), 1047559  }
  0xee   : >> { %v953_v51 = vmul.f32 %v1887_v25, %v951_v43  ;;  %v954_v54 = vmul.f32 %v1883_v26, %v952_v47  ;;  %v1633_v35 = vld [vmem:[%s2174_s18 + $0x18] sm:$0xff]  ;;  %v1646_v25 = vld [vmem:[%s2174_s18 + $0x20] sm:$0xff]  ;;  %v1647_v63 = vld [vmem:[%s2174_s18 + $0x28] sm:$0xff] }
  0xef   : >> { %v1660_v4 = vld [vmem:[%s2174_s18 + $0x30] sm:$0xff]  ;;  %v1661_v5 = vld [vmem:[%s2174_s18 + $0x38] sm:$0xff]  ;;  %1073 = vbcast.lane.b32.xlu1 (%p942_p5), %v1994_v13, 280  ;;  %1065 = vbcast.lane.b32.xlu0 (%p942_p5), %v1989_v11, 280 }
  0xf0   : >> { %v958_v22 = vadd.f32 %v956_v44, %v953_v51  ;;  %v959_v55 = vadd.f32 %v957_v39, %v954_v54 }
  0xf2   : >> { %v1685_v24 = vpack.c.bf16 %v958_v22, %v958_v22  ;;  %v1686_v60 = vpack.c.bf16 %v959_v55, %v959_v55  ;;  %v979_v61 = vmul.f32 %v1632_v41, %v958_v22  ;;  %v980_v62 = vmul.f32 %v1633_v35, %v959_v55 }
  0xf3   : > { %1057 = vbcast.lane.b32.xlu1 (%p942_p5), %v1984_v7, 280  ;;  %1053 = vbcast.lane.b32.xlu0 (%p942_p5), %v1984_v7, 272  ;;  %v1673_v7 = vmul.f32 (%p942_p5), -1.442695, %v525_v8 }
  0xf4   : >> { %972 = vst.msk [vmem:[%s970_s21] sm:$0xf] %vm971_vm3, %v1685_v24  ;;  %973 = vst.msk [vmem:[%s970_s21 + $0x4] sm:$0xf] %vm971_vm3, %v1686_v60  ;;  %v984_v26 = vadd.f32 %v1636_v58, %v979_v61  ;;  %v985_v0 = vadd.f32 %v1637_v59, %v980_v62 }
  0xf5   : > { %1841 = vpow2.f32 (%p942_p5), %v1673_v7 }
  0xf6   : >> { %v1691_v46 = vpack.c.bf16 %v984_v26, %v984_v26  ;;  %v1692_v56 = vpack.c.bf16 %v985_v0, %v985_v0  ;;  %v1004_v57 = vmul.f32 %v1646_v25, %v984_v26  ;;  %v1005_v48 = vmul.f32 %v1647_v63, %v985_v0 }
  0xf7   : > { %1081 = vbcast.lane.b32.xlu1 (%p942_p5), %v1999_v15, 280  ;;  %1077 = vbcast.lane.b32.xlu0 (%p942_p5), %v1999_v15, 272 }
  0xf8   : >> { %1642 = vst.msk [vmem:[%s970_s21 + $0x8] sm:$0xf] %vm971_vm3, %v1691_v46  ;;  %1643 = vst.msk [vmem:[%s970_s21 + $0xc] sm:$0xf] %vm971_vm3, %v1692_v56  ;;  %v1009_v50 = vadd.f32 %v1650_v53, %v1004_v57  ;;  %v1010_v1 = vadd.f32 %v1651_v45, %v1005_v48 }
  0xfa   : >> { %v1696_v12 = vpack.c.bf16 %v1009_v50, %v1009_v50  ;;  %v1697_v14 = vpack.c.bf16 %v1010_v1, %v1010_v1  ;;  %v1029_v16 = vmul.f32 %v1660_v4, %v1009_v50  ;;  %v1030_v18 = vmul.f32 %v1661_v5, %v1010_v1 }
  0xfb   : > { %1089 = vbcast.lane.b32.xlu1 (%p942_p5), %v2004_v17, 280  ;;  %1085 = vbcast.lane.b32.xlu0 (%p942_p5), %v2004_v17, 272 }
  0xfc   : >> { %1656 = vst.msk [vmem:[%s970_s21 + $0x10] sm:$0xf] %vm971_vm3, %v1696_v12  ;;  %1657 = vst.msk [vmem:[%s970_s21 + $0x14] sm:$0xf] %vm971_vm3, %v1697_v14  ;;  %v1034_v20 = vadd.f32 %v1664_v2, %v1029_v16   ;;  %v1035_v28 = vadd.f32 %v1665_v9, %v1030_v18   ;;  %944 = sbr.rel (!%p942_p5) target bundleno = 231 (0xe7), region = 126 }
  0xfe   : >> { %v1701_v29 = vpack.c.bf16 %v1034_v20, %v1034_v20  ;;  %v1702_v30 = vpack.c.bf16 %v1035_v28, %v1035_v28  ;;  %v2297_v26 = vmov %v1035_v28  ;;  %v2298_v25 = vmov %v1034_v20  ;;  %1049 = vst.msk [vmem:[#allocation2] sm:$0xff] (%p942_p5), %vm519_vm0, %v1034_v20  ;;  %1050 = vst.msk [vmem:[#allocation2 + $0x8] sm:$0xff] (%p942_p5), %vm519_vm0, %v1035_v28 }
  0xff   : > { %1097 = vbcast.lane.b32.xlu1 (%p942_p5), %v2009_v19, 280  ;;  %1093 = vbcast.lane.b32.xlu0 (%p942_p5), %v2009_v19, 272 }
 0x100   : >> { %1670 = vst.msk [vmem:[%s970_s21 + $0x18] sm:$0xf] %vm971_vm3, %v1701_v29  ;;  %1671 = vst.msk [vmem:[%s970_s21 + $0x1c] sm:$0xf] %vm971_vm3, %v1702_v30 }
 0x102   : > { %v1842_v42 = vpop.eup %1841 }
 0x103   : > { %1105 = vbcast.lane.b32.xlu1 %v2014_v21, 280  ;;  %1101 = vbcast.lane.b32.xlu0 %v2014_v21, 272  ;;  %v1270_v24 = vadd.f32 1.0, %v1842_v42 }
 0x105   : > { %1843 = vrcp.f32 %v1270_v24 }
 0x107   : > { %1113 = vbcast.lane.b32.xlu1 %v2019_v23, 280  ;;  %1109 = vbcast.lane.b32.xlu0 %v2019_v23, 272  ;;  %v1745_v11 = vld [vmem:[#allocation5 + $0x10] sm:$0xff]   ;;  %v1744_v13 = vld [vmem:[#allocation5 + $0x8] sm:$0xff]   ;;  %v1713_v33 = vld [vmem:[#allocation5] sm:$0xff]  }
 0x108   : > { %v1722_v15 = vunpack.c.l.bf16 %v1745_v11  ;;  %v1718_v17 = vunpack.c.l.bf16 %v1744_v13  ;;  %v1723_v32 = vunpack.c.h.bf16 %v1745_v11  ;;  %v1719_v19 = vunpack.c.h.bf16 %v1744_v13  ;;  %v1746_v40 = vld [vmem:[#allocation5 + $0x18] sm:$0xff]   ;;  %v1747_v61 = vld [vmem:[#allocation5 + $0x20] sm:$0xff]   ;;  %v1748_v5 = vld [vmem:[#allocation5 + $0x28] sm:$0xff]  }
 0x109   : > { %v1715_v23 = vunpack.c.h.bf16 %v1713_v33  ;;  %v1714_v38 = vunpack.c.l.bf16 %v1713_v33  ;;  %v1727_v58 = vunpack.c.h.bf16 %v1746_v40  ;;  %v1726_v59 = vunpack.c.l.bf16 %v1746_v40  ;;  %v1749_v30 = vld [vmem:[#allocation5 + $0x30] sm:$0xff]  }
 0x10a   : > { %v1731_v56 = vunpack.c.h.bf16 %v1747_v61  ;;  %v1730_v57 = vunpack.c.l.bf16 %v1747_v61  ;;  %v1735_v28 = vunpack.c.h.bf16 %v1748_v5  ;;  %v1734_v29 = vunpack.c.l.bf16 %v1748_v5  ;;  %v1672_v13 = vld [vmem:[%s2294_s6] ss:$0 sm:$0xff] }
 0x112   : > { %v1844_v24 = vpop.eup %1843 }
 0x113   : > { %v2254_v5 = vmul.f32 %v1844_v24, %v525_v8 }
 0x15d   : > { %v1070_v31 = vpop.permute.xlu1 %1069  ;;  %v1062_v3 = vpop.permute.xlu0 %1061 }
 0x15e   : > { %v1151_v36 = vmul.f32 %v1722_v15, %v1070_v31  ;;  %v1149_v10 = vmul.f32 %v1718_v17, %v1062_v3 }
 0x160   : > { %v1181_v43 = vsel %vm519_vm0, %v1151_v36, 0.0  ;;  %v1172_v44 = vsel %vm519_vm0, %v1149_v10, 0.0  ;;  %v1739_v36 = vunpack.c.h.bf16 %v1749_v30 }
 0x161   : > { %v1074_v21 = vpop.permute.xlu1 %1073  ;;  %v1066_v34 = vpop.permute.xlu0 %1065 }
 0x162   : > { %v1152_v27 = vmul.f32 %v1723_v32, %v1074_v21  ;;  %v1150_v37 = vmul.f32 %v1719_v19, %v1066_v34 }
 0x164   : > { %v1182_v47 = vsel %vm519_vm0, %v1152_v27, 0.0  ;;  %v1173_v51 = vsel %vm519_vm0, %v1150_v37, 0.0  ;;  %v1738_v27 = vunpack.c.l.bf16 %v1749_v30  ;;  %v1750_v37 = vld [vmem:[#allocation5 + $0x38] sm:$0xff]  }
 0x165   : > { %v1183_v54 = vadd.f32 %v1182_v47, %v1181_v43  ;;  %v1174_v39 = vadd.f32 %v1173_v51, %v1172_v44  ;;  %v1058_v41 = vpop.permute.xlu1 %1057  ;;  %v1054_v35 = vpop.permute.xlu0 %1053 }
 0x166   : > { %v1148_v22 = vmul.f32 %v1715_v23, %v1058_v41  ;;  %v1147_v55 = vmul.f32 %v1714_v38, %v1054_v35  ;;  %v2245_v23 = vmul.f32 %v1672_v13, %v523_v52  ;;  %v1743_v35 = vunpack.c.h.bf16 %v1750_v37 }
 0x167   : > { %v1175_v60 = vrot.slane %v1174_v39, 4  ;;  %v1184_v63 = vrot.slane %v1183_v54, 4  ;;  %v1275_v13 = vrot.slane %v2254_v5, 1 }
 0x168   : > { %v1164_v62 = vsel %vm519_vm0, %v1148_v22, 0.0  ;;  %v1163_v25 = vsel %vm519_vm0, %v1147_v55, 0.0  ;;  %v1245_v49 = vrot.slane %v2245_v23, 2 }
 0x169   : > { %v1165_v26 = vadd.f32 %v1164_v62, %v1163_v25  ;;  %v1082_v0 = vpop.permute.xlu1 %1081  ;;  %v1078_v53 = vpop.permute.xlu0 %1077  ;;  %v1176_v48 = vadd.f32 %v1175_v60, %v1174_v39  ;;  %v1185_v2 = vadd.f32 %v1184_v63, %v1183_v54 }
 0x16a   : > { %v1154_v45 = vmul.f32 %v1727_v58, %v1082_v0  ;;  %v1153_v46 = vmul.f32 %v1726_v59, %v1078_v53 }
 0x16b   : > { %v1166_v4 = vrot.slane %v1165_v26, 4  ;;  %v1177_v7 = vrot.slane %v1176_v48, 2  ;;  %v1186_v31 = vrot.slane %v1185_v2, 2 }
 0x16c   : > { %v1191_v50 = vsel %vm519_vm0, %v1154_v45, 0.0  ;;  %v1190_v1 = vsel %vm519_vm0, %v1153_v46, 0.0  ;;  %v1742_v45 = vunpack.c.l.bf16 %v1750_v37 }
 0x16d   : > { %v1167_v9 = vadd.f32 %v1166_v4, %v1165_v26  ;;  %v1192_v12 = vadd.f32 %v1191_v50, %v1190_v1  ;;  %v1090_v14 = vpop.permute.xlu1 %1089  ;;  %v1086_v16 = vpop.permute.xlu0 %1085  ;;  %v1178_v38 = vadd.f32 %v1177_v7, %v1176_v48  ;;  %v1187_v47 = vadd.f32 %v1186_v31, %v1185_v2 }
 0x16e   : > { %v1156_v18 = vmul.f32 %v1731_v56, %v1090_v14  ;;  %v1155_v20 = vmul.f32 %v1730_v57, %v1086_v16  ;;  %v1244_v1 = vrot.slane %v2245_v23, 1  ;;  %v1246_v2 = vrot.slane %v2245_v23, 3 }
 0x16f   : > { %v1193_v11 = vrot.slane %v1192_v12, 4  ;;  %v1168_v3 = vrot.slane %v1167_v9, 2  ;;  %v1179_v52 = vrot.slane %v1178_v38, 1  ;;  %v1188_v63 = vrot.slane %v1187_v47, 1 }
 0x170   : > { %v1200_v15 = vsel %vm519_vm0, %v1156_v18, 0.0  ;;  %v1199_v17 = vsel %vm519_vm0, %v1155_v20, 0.0  ;;  %v1276_v31 = vrot.slane %v2254_v5, 2 }
 0x171   : > { %v1194_v32 = vadd.f32 %v1193_v11, %v1192_v12  ;;  %v1098_v19 = vpop.permute.xlu1 %1097  ;;  %v1094_v33 = vpop.permute.xlu0 %1093  ;;  %v1201_v10 = vadd.f32 %v1200_v15, %v1199_v17  ;;  %v1169_v51 = vadd.f32 %v1168_v3, %v1167_v9  ;;  %v1180_v50 = vadd.f32 %v1179_v52, %v1178_v38 }
 0x172   : > { %v1158_v21 = vmul.f32 %v1735_v28, %v1098_v19  ;;  %v1157_v34 = vmul.f32 %v1734_v29, %v1094_v33  ;;  %v1247_v12 = vrot.slane %v2245_v23, 4  ;;  %v1189_v18 = vadd.f32 %v1188_v63, %v1187_v47 }
 0x173   : > { %v1195_v40 = vrot.slane %v1194_v32, 2  ;;  %v1202_v42 = vrot.slane %v1201_v10, 4  ;;  %v1170_v26 = vrot.slane %v1169_v51, 1  ;;  %v1260_v8 = vadd.f32 %v1244_v1, %v1180_v50 }
 0x174   : > { %v1209_v43 = vsel %vm519_vm0, %v1158_v21, 0.0  ;;  %v1208_v44 = vsel %vm519_vm0, %v1157_v34, 0.0  ;;  %v1248_v15 = vrot.slane %v2245_v23, 5  ;;  %v1277_v3 = vrot.slane %v2254_v5, 3 }
 0x175   : > { %v1196_v54 = vadd.f32 %v1195_v40, %v1194_v32  ;;  %v1106_v39 = vpop.permute.xlu1 %1105  ;;  %v1102_v41 = vpop.permute.xlu0 %1101  ;;  %v1203_v22 = vadd.f32 %v1202_v42, %v1201_v10  ;;  %v1210_v55 = vadd.f32 %v1209_v43, %v1208_v44  ;;  %v1171_v20 = vadd.f32 %v1170_v26, %v1169_v51 }
 0x176   : > { %v1160_v58 = vmul.f32 %v1739_v36, %v1106_v39  ;;  %v1159_v59 = vmul.f32 %v1738_v27, %v1102_v41  ;;  %v1278_v10 = vrot.slane %v2254_v5, 4  ;;  %v1261_v34 = vadd.f32 %v1245_v49, %v1189_v18 }
 0x177   : > { %v1204_v60 = vrot.slane %v1203_v22, 2  ;;  %v1211_v61 = vrot.slane %v1210_v55, 4  ;;  %v1197_v0 = vrot.slane %v1196_v54, 1  ;;  %v1259_v33 = vadd.f32 %v2245_v23, %v1171_v20 }
 0x178   : > { %v1218_v62 = vsel %vm519_vm0, %v1160_v58, 0.0  ;;  %v1217_v25 = vsel %vm519_vm0, %v1159_v59, 0.0  ;;  %v1291_v40 = vmul.f32 %v1275_v13, %v1260_v8  ;;  %v1279_v42 = vrot.slane %v2254_v5, 5 }
 0x179   : > { %v1114_v53 = vpop.permute.xlu1 %1113  ;;  %v1205_v46 = vadd.f32 %v1204_v60, %v1203_v22  ;;  %v1212_v56 = vadd.f32 %v1211_v61, %v1210_v55  ;;  %v1219_v57 = vadd.f32 %v1218_v62, %v1217_v25  ;;  %v1110_v4 = vpop.permute.xlu0 %1109  ;;  %v1198_v28 = vadd.f32 %v1197_v0, %v1196_v54 }
 0x17a   : > { %v1162_v48 = vmul.f32 %v1743_v35, %v1114_v53  ;;  %v1161_v29 = vmul.f32 %v1742_v45, %v1110_v4  ;;  %v1249_v51 = vrot.slane %v2245_v23, 6  ;;  %v1290_v54 = vmul.f32 %v2254_v5, %v1259_v33 }
 0x17b   : > { %v1206_v9 = vrot.slane %v1205_v46, 1  ;;  %v1213_v14 = vrot.slane %v1212_v56, 2  ;;  %v1220_v16 = vrot.slane %v1219_v57, 4  ;;  %v1262_v36 = vadd.f32 %v1246_v2, %v1198_v28 }
 0x17c   : > { %v1227_v6 = vsel %vm519_vm0, %v1162_v48, 0.0  ;;  %v1226_v17 = vsel %vm519_vm0, %v1161_v29, 0.0  ;;  %v1292_v35 = vmul.f32 %v1276_v31, %v1261_v34  ;;  %v1280_v58 = vrot.slane %v2254_v5, 6 }
 0x17d   : > { %v1207_v30 = vadd.f32 %v1206_v9, %v1205_v46  ;;  %v1214_v7 = vadd.f32 %v1213_v14, %v1212_v56  ;;  %v1221_v11 = vadd.f32 %v1220_v16, %v1219_v57  ;;  %v1228_v21 = vadd.f32 %v1227_v6, %v1226_v17 }
 0x17e   : > { %v1293_v39 = vmul.f32 %v1277_v3, %v1262_v36  ;;  %v1705_v59 = vpack.c.bf16 %v1291_v40, %v1291_v40  ;;  %v1704_v60 = vpack.c.bf16 %v1290_v54, %v1290_v54  ;;  %v1706_v25 = vpack.c.bf16 %v1292_v35, %v1292_v35 }
 0x17f   : > { %v1215_v32 = vrot.slane %v1214_v7, 1  ;;  %v1222_v19 = vrot.slane %v1221_v11, 2  ;;  %v1263_v27 = vadd.f32 %v1247_v12, %v1207_v30  ;;  %v1229_v43 = vrot.slane %v1228_v21, 4 }
 0x180   : > { %v1707_v61 = vpack.c.bf16 %v1293_v39, %v1293_v39  ;;  %v1331_v0 = vunpack.c.l.b16 %v1705_v59  ;;  %v1250_v46 = vrot.slane %v2245_v23, 7  ;;  %v1330_v57 = vunpack.c.l.b16 %v1704_v60 }
 0x181   : > { %v1216_v37 = vadd.f32 %v1215_v32, %v1214_v7  ;;  %v1223_v38 = vadd.f32 %v1222_v19, %v1221_v11  ;;  %v1230_v41 = vadd.f32 %v1229_v43, %v1228_v21  ;;  %v1294_v22 = vmul.f32 %v1278_v10, %v1263_v27 }
 0x182   : > { %v1333_v48 = vunpack.c.l.b16 %v1707_v61  ;;  %v1281_v50 = vrot.slane %v2254_v5, 7  ;;  %v1332_v1 = vunpack.c.l.b16 %v1706_v25  ;;  %v1338_v9 = vrot.slane %v1331_v0, 7 }
 0x183   : > { %v1264_v44 = vadd.f32 %v1248_v15, %v1216_v37  ;;  %v1224_v47 = vrot.slane %v1223_v38, 1  ;;  %v1231_v52 = vrot.slane %v1230_v41, 2  ;;  %v1708_v63 = vpack.c.bf16 %v1294_v22, %v1294_v22 }
 0x184   : > { %v1340_v18 = vsel %vm1339_vm4, %v1338_v9, %v1330_v57  ;;  %v1344_v20 = vrot.slane %v1333_v48, 5  ;;  %v1341_v29 = vrot.slane %v1332_v1, 6 }
 0x185   : > { %v1225_v55 = vadd.f32 %v1224_v47, %v1223_v38  ;;  %v1295_v49 = vmul.f32 %v1279_v42, %v1264_v44  ;;  %v1232_v62 = vadd.f32 %v1231_v52, %v1230_v41  ;;  %v1334_v2 = vunpack.c.l.b16 %v1708_v63 }
 0x186   : > { %v1343_v11 = vsel %vm1342_vm5, %v1341_v29, %v1340_v18 }
 0x187   : > { %v1265_v24 = vadd.f32 %v1249_v51, %v1225_v55  ;;  %v1709_v53 = vpack.c.bf16 %v1295_v49, %v1295_v49  ;;  %v1233_v45 = vrot.slane %v1232_v62, 1  ;;  %v1347_v23 = vrot.slane %v1334_v2, 4 }
 0x188   : > { %v1346_v6 = vsel %vm1345_vm6, %v1344_v20, %v1343_v11 }
 0x189   : > { %v1296_v26 = vmul.f32 %v1280_v58, %v1265_v24  ;;  %v1234_v4 = vadd.f32 %v1233_v45, %v1232_v62  ;;  %v1335_v12 = vunpack.c.l.b16 %v1709_v53  ;;  %v1349_v13 = vsel %vm1348_vm7, %v1347_v23, %v1346_v6 }
 0x18b   : > { %v1710_v56 = vpack.c.bf16 %v1296_v26, %v1296_v26  ;;  %v1266_v14 = vadd.f32 %v1250_v46, %v1234_v4  ;;  %v1350_v30 = vrot.slane %v1335_v12, 3 }
 0x18d   : > { %v1336_v16 = vunpack.c.l.b16 %v1710_v56  ;;  %v1297_v28 = vmul.f32 %v1281_v50, %v1266_v14  ;;  %v1352_v15 = vsel %vm1351_vm8, %v1350_v30, %v1349_v13 }
 0x18f   : > { %v1711_v7 = vpack.c.bf16 %v1297_v28, %v1297_v28  ;;  %v1353_v5 = vrot.slane %v1336_v16, 2 }
 0x191   : > { %v1337_v8 = vunpack.c.l.b16 %v1711_v7  ;;  %v1355_v31 = vsel %vm1354_vm9, %v1353_v5, %v1352_v15 }
 0x193   : > { %v1356_v17 = vrot.slane %v1337_v8, 1 }
 0x195   : > { %v1358_v3 = vsel %vm1357_vm10, %v1356_v17, %v1355_v31 }
 0x196   : > { %v1359_v32 = vpack.c.b16 %v1358_v3, %v1358_v3 }
 0x198   : > { %1362 = vst.msk [vmem:[%s514_s22] sm:$0xf] %vm971_vm3, %v1359_v32 }
 0x199 PF: > { %s18_s29 = sadd.s32 1, %s1879_s29   ;;  %s2299_s27 = smov %s1875_s28 }
 0x19a   : > { %p15_p6 = scmp.ge.s32.totalorder %s18_s29, 4   ;;  %s2300_s28 = smov %s2302_s30 }
 0x19c   :  { %17 = sbr.rel (!%p15_p6) target bundleno = 2 (0x2), region = 137 }

</bundles_post_ra>
